<compile_context>
chip_gen: v5e
topology: v5e:2x2
jax: 0.10.0
libtpu: 0.0.40
codegen_flags: <defaults>
</compile_context>

<pallas_src>
import jax
import jax.numpy as jnp
from jax.experimental import pallas as pl
from jax.experimental.pallas import tpu as pltpu


def _round_up(n, m):
    return ((n + m - 1) // m) * m


def _ae_kernel(x_ref,
               we1_ref, be1_ref, we2_ref, be2_ref,      # encoder
               wd1_ref, bd1_ref, wd2_ref, bd2_ref,      # decoder
               wm1_ref, bm1_ref, wm2_ref, bm2_ref,      # mean_decoder
               out_ref, mean_ref):
    bf16 = jnp.bfloat16
    f32 = jnp.float32

    x = x_ref[...].astype(bf16)                          # (bm, input_dim)

    # ---- encoder: Linear -> ReLU -> Linear -> ReLU (bf16 MXU, f32 acc) ----
    h1 = jnp.dot(x, we1_ref[...], preferred_element_type=f32) + be1_ref[...]
    h1 = jnp.maximum(h1, 0.0)
    z = jnp.dot(h1.astype(bf16), we2_ref[...],
                preferred_element_type=f32) + be2_ref[...]
    z = jnp.maximum(z, 0.0)                              # (bm, latent) f32
    z_bf = z.astype(bf16)

    # ---- mean_decoder: Linear -> ReLU -> 1-wide Linear as a lane reduction
    # (cross-lane reduce rides the XLU slot, ~free while MXU/DMA dominate) ----
    m1 = jnp.dot(z_bf, wm1_ref[...], preferred_element_type=f32) + bm1_ref[...]
    m1 = jnp.maximum(m1, 0.0)                            # (bm, mean_hidden_pad)
    mean_ref[...] = (jnp.sum(m1 * wm2_ref[...], axis=-1, keepdims=True)
                     + bm2_ref[...])                     # (bm, 1)

    # ---- decoder: Linear -> ReLU -> Linear (no final ReLU) ----
    d1 = jnp.dot(z_bf, wd1_ref[...], preferred_element_type=f32) + bd1_ref[...]
    d1 = jnp.maximum(d1, 0.0)
    out_ref[...] = (jnp.dot(d1.astype(bf16), wd2_ref[...],
                            preferred_element_type=f32) + bd2_ref[...])


def autoencoder_decoupled_forward(x, params, *, bm=None):
    """x: (B, C, H, W) float32.  Returns (out.view_as(x), out_mean[..., None])."""
    B = x.shape[0]
    input_shape = x.shape
    x_in = x.reshape(B, -1).astype(jnp.float32)          # flatten(start_dim=1)
    input_dim = x_in.shape[1]

    # Batch tile: multiple of 8 sublanes, capped at 256 (fills MXU M on v6e/v7x
    # and keeps double-buffered x/out tiles comfortably inside v7x VMEM).
    if bm is None:
        bm = min(256, _round_up(B, 8))
    B_pad = _round_up(B, bm)
    if B_pad != B:
        x_in = jnp.pad(x_in, ((0, B_pad - B), (0, 0)))
    grid = (B_pad // bm,)

    def weight_spec(p):
        # Full-array block with a constant index_map -> DMA'd once, stays
        # VMEM-resident across all grid steps.
        return pl.BlockSpec(p.shape, lambda i: (0,) * p.ndim)

    in_specs = [pl.BlockSpec((bm, input_dim), lambda i: (i, 0))]
    in_specs += [weight_spec(p) for p in params]
    out_specs = (pl.BlockSpec((bm, input_dim), lambda i: (i, 0)),
                 pl.BlockSpec((bm, 1), lambda i: (i, 0)))

    out_flat, out_mean = pl.pallas_call(
        _ae_kernel,
        out_shape=(jax.ShapeDtypeStruct((B_pad, input_dim), jnp.float32),
                   jax.ShapeDtypeStruct((B_pad, 1), jnp.float32)),
        grid=grid,
        in_specs=in_specs,
        out_specs=out_specs,
        compiler_params=pltpu.CompilerParams(
            dimension_semantics=("parallel",),           # v7x: shard over 2 TCs
            vmem_limit_bytes=48 * 1024 * 1024,
        ),
    )(x_in, *params)

    out_flat = out_flat[:B]                              # drop batch padding
    out_mean = out_mean[:B]
    # matches: out.view(input_shape), out_mean.unsqueeze(-1)
    return out_flat.reshape(input_shape), out_mean[..., None]


def make_params(key, input_dim, enc_hidden):
    """Deterministic synthetic parameters.

    Weights are stored as (in_dim, out_dim) and cast to bf16; biases stay f32.
    The mean head (latent//2 wide) is zero-padded to a multiple of 128 lanes
    (math-identical: padded ReLU outputs are 0 and padded wm2 weights are 0).
    """
    encoder_dims = [input_dim, *enc_hidden]              # append_mode=1, added_features_dim=0
    dec_hidden = enc_hidden[::-1][1:]                    # decoder_hidden_dims default
    decoder_dims = [encoder_dims[-1], *dec_hidden, input_dim]
    mean_hidden = decoder_dims[0] // 2
    mean_hidden_pad = max(128, _round_up(mean_hidden, 128))

    def linear(k, din, dout):
        kw, kb = jax.random.split(k)
        w = jax.random.normal(kw, (din, dout), jnp.float32) * (1.0 / jnp.sqrt(din))
        b = jax.random.normal(kb, (1, dout), jnp.float32) * 0.01
        return w, b

    keys = jax.random.split(key, 6)
    we1, be1 = linear(keys[0], encoder_dims[0], encoder_dims[1])
    we2, be2 = linear(keys[1], encoder_dims[1], encoder_dims[2])
    wd1, bd1 = linear(keys[2], decoder_dims[0], decoder_dims[1])
    wd2, bd2 = linear(keys[3], decoder_dims[1], decoder_dims[2])
    wm1, bm1 = linear(keys[4], decoder_dims[0], mean_hidden)
    wm2_full, bm2 = linear(keys[5], mean_hidden, 1)

    pad = mean_hidden_pad - mean_hidden
    wm1 = jnp.pad(wm1, ((0, 0), (0, pad)))
    bm1 = jnp.pad(bm1, ((0, 0), (0, pad)))
    wm2 = jnp.pad(wm2_full.reshape(1, mean_hidden), ((0, 0), (0, pad)))

    bf = lambda a: a.astype(jnp.bfloat16)
    return (bf(we1), be1, bf(we2), be2,
            bf(wd1), bd1, bf(wd2), bd2,
            bf(wm1), bm1, bf(wm2), bm2)


def _reference(x, params):
    """Pure-JAX reference mirroring the kernel's bf16-matmul / f32-accumulate math."""
    (we1, be1, we2, be2, wd1, bd1, wd2, bd2, wm1, bm1, wm2, bm2) = params
    bf16, f32 = jnp.bfloat16, jnp.float32

    def dot(a, w):
        return jnp.dot(a.astype(bf16), w, preferred_element_type=f32)

    B = x.shape[0]
    xi = x.reshape(B, -1).astype(f32)
    h1 = jnp.maximum(dot(xi, we1) + be1, 0.0)
    z = jnp.maximum(dot(h1, we2) + be2, 0.0)
    m1 = jnp.maximum(dot(z, wm1) + bm1, 0.0)
    mean = jnp.sum(m1 * wm2, axis=-1, keepdims=True) + bm2
    d1 = jnp.maximum(dot(z, wd1) + bd1, 0.0)
    out = dot(d1, wd2) + bd2
    return out.reshape(x.shape), mean[..., None]


if __name__ == "__main__":
    # Small shapes: x is NCHW (B=2, C=4, H=16, W=16) -> input_dim = 1024
    B, C, H, W = 2, 4, 16, 16
    input_dim = C * H * W
    enc_hidden = [256, 128]                              # encoder_hidden_dims

    key = jax.random.PRNGKey(0)
    kx, kp = jax.random.split(key)
    x = jax.random.normal(kx, (B, C, H, W), jnp.float32)
    params = make_params(kp, input_dim, enc_hidden)

    out, out_mean = autoencoder_decoupled_forward(x, params)
    out = jax.block_until_ready(out)
    out_mean = jax.block_until_ready(out_mean)

    # sanity check against a pure-JAX reference with matching precision
    ref_out, ref_mean = _reference(x, params)
    assert out.shape == (B, C, H, W)
    assert out_mean.shape == (B, 1, 1)
    assert jnp.allclose(out, ref_out, rtol=1e-2, atol=1e-2)
    assert jnp.allclose(out_mean, ref_mean, rtol=1e-2, atol=1e-2)

    print("KERNEL_OK")
</pallas_src>

<mosaic_0001>
module attributes {stable_mosaic.version = 11 : i64} {
  func.func @_ae_kernel(%arg0: i32, %arg1: memref<8x1024xf32, #tpu.memory_space<vmem>>, %arg2: memref<1024x256xbf16, #tpu.memory_space<vmem>>, %arg3: memref<1x256xf32, #tpu.memory_space<vmem>>, %arg4: memref<256x128xbf16, #tpu.memory_space<vmem>>, %arg5: memref<1x128xf32, #tpu.memory_space<vmem>>, %arg6: memref<128x256xbf16, #tpu.memory_space<vmem>>, %arg7: memref<1x256xf32, #tpu.memory_space<vmem>>, %arg8: memref<256x1024xbf16, #tpu.memory_space<vmem>>, %arg9: memref<1x1024xf32, #tpu.memory_space<vmem>>, %arg10: memref<128x128xbf16, #tpu.memory_space<vmem>>, %arg11: memref<1x128xf32, #tpu.memory_space<vmem>>, %arg12: memref<1x128xbf16, #tpu.memory_space<vmem>>, %arg13: memref<1x1xf32, #tpu.memory_space<vmem>>, %arg14: memref<8x1024xf32, #tpu.memory_space<vmem>>, %arg15: memref<8x1xf32, #tpu.memory_space<vmem>>) attributes {dimension_semantics = [#tpu.dimension_semantics<parallel>], iteration_bounds = array<i64: 1>, scalar_prefetch = 0 : i64, scratch_operands = 0 : i64, tpu.core_type = #tpu.core_type<tc>, window_params = [{transform_indices = @transform_0, window_bounds = array<i64: 8, 1024>}, {pipeline_mode = #tpu.pipeline_mode<synchronous>, transform_indices = @transform_1, window_bounds = array<i64: 1024, 256>}, {pipeline_mode = #tpu.pipeline_mode<synchronous>, transform_indices = @transform_2, window_bounds = array<i64: 1, 256>}, {pipeline_mode = #tpu.pipeline_mode<synchronous>, transform_indices = @transform_3, window_bounds = array<i64: 256, 128>}, {pipeline_mode = #tpu.pipeline_mode<synchronous>, transform_indices = @transform_4, window_bounds = array<i64: 1, 128>}, {pipeline_mode = #tpu.pipeline_mode<synchronous>, transform_indices = @transform_5, window_bounds = array<i64: 128, 256>}, {pipeline_mode = #tpu.pipeline_mode<synchronous>, transform_indices = @transform_6, window_bounds = array<i64: 1, 256>}, {pipeline_mode = #tpu.pipeline_mode<synchronous>, transform_indices = @transform_7, window_bounds = array<i64: 256, 1024>}, {pipeline_mode = #tpu.pipeline_mode<synchronous>, transform_indices = @transform_8, window_bounds = array<i64: 1, 1024>}, {pipeline_mode = #tpu.pipeline_mode<synchronous>, transform_indices = @transform_9, window_bounds = array<i64: 128, 128>}, {pipeline_mode = #tpu.pipeline_mode<synchronous>, transform_indices = @transform_10, window_bounds = array<i64: 1, 128>}, {pipeline_mode = #tpu.pipeline_mode<synchronous>, transform_indices = @transform_11, window_bounds = array<i64: 1, 128>}, {pipeline_mode = #tpu.pipeline_mode<synchronous>, transform_indices = @transform_12, window_bounds = array<i64: 1, 1>}, {transform_indices = @transform_13, window_bounds = array<i64: 8, 1024>}, {transform_indices = @transform_14, window_bounds = array<i64: 8, 1>}]} {
    %c0 = arith.constant 0 : index
    %c0_0 = arith.constant 0 : index
    %0 = vector.load %arg1[%c0, %c0_0] : memref<8x1024xf32, #tpu.memory_space<vmem>>, vector<8x1024xf32>
    %1 = arith.truncf %0 : vector<8x1024xf32> to vector<8x1024xbf16>
    %c0_1 = arith.constant 0 : index
    %c0_2 = arith.constant 0 : index
    %2 = vector.load %arg2[%c0_1, %c0_2] : memref<1024x256xbf16, #tpu.memory_space<vmem>>, vector<1024x256xbf16>
    %cst = arith.constant dense<0.000000e+00> : vector<8x256xf32>
    %3 = tpu.matmul %1, %2, %cst {dimension_numbers = #tpu.dot_dimension_numbers<[1], [0], [0], [1], [0, 0, 1, 1], [], []>} : vector<8x1024xbf16>, vector<1024x256xbf16>, vector<8x256xf32> -> vector<8x256xf32>
    %c0_3 = arith.constant 0 : index
    %c0_4 = arith.constant 0 : index
    %4 = vector.load %arg3[%c0_3, %c0_4] : memref<1x256xf32, #tpu.memory_space<vmem>>, vector<1x256xf32>
    %5 = vector.broadcast %4 : vector<1x256xf32> to vector<8x256xf32>
    %6 = arith.addf %3, %5 : vector<8x256xf32>
    %cst_5 = arith.constant 0.000000e+00 : f32
    %7 = vector.broadcast %cst_5 : f32 to vector<8x256xf32>
    %8 = arith.maximumf %6, %7 : vector<8x256xf32>
    %9 = arith.truncf %8 : vector<8x256xf32> to vector<8x256xbf16>
    %c0_6 = arith.constant 0 : index
    %c0_7 = arith.constant 0 : index
    %10 = vector.load %arg4[%c0_6, %c0_7] : memref<256x128xbf16, #tpu.memory_space<vmem>>, vector<256x128xbf16>
    %cst_8 = arith.constant dense<0.000000e+00> : vector<8x128xf32>
    %11 = tpu.matmul %9, %10, %cst_8 {dimension_numbers = #tpu.dot_dimension_numbers<[1], [0], [0], [1], [0, 0, 1, 1], [], []>} : vector<8x256xbf16>, vector<256x128xbf16>, vector<8x128xf32> -> vector<8x128xf32>
    %c0_9 = arith.constant 0 : index
    %c0_10 = arith.constant 0 : index
    %12 = vector.load %arg5[%c0_9, %c0_10] : memref<1x128xf32, #tpu.memory_space<vmem>>, vector<1x128xf32>
    %13 = vector.broadcast %12 : vector<1x128xf32> to vector<8x128xf32>
    %14 = arith.addf %11, %13 : vector<8x128xf32>
    %cst_11 = arith.constant 0.000000e+00 : f32
    %15 = vector.broadcast %cst_11 : f32 to vector<8x128xf32>
    %16 = arith.maximumf %14, %15 : vector<8x128xf32>
    %17 = arith.truncf %16 : vector<8x128xf32> to vector<8x128xbf16>
    %c0_12 = arith.constant 0 : index
    %c0_13 = arith.constant 0 : index
    %18 = vector.load %arg10[%c0_12, %c0_13] : memref<128x128xbf16, #tpu.memory_space<vmem>>, vector<128x128xbf16>
    %cst_14 = arith.constant dense<0.000000e+00> : vector<8x128xf32>
    %19 = tpu.matmul %17, %18, %cst_14 {dimension_numbers = #tpu.dot_dimension_numbers<[1], [0], [0], [1], [0, 0, 1, 1], [], []>} : vector<8x128xbf16>, vector<128x128xbf16>, vector<8x128xf32> -> vector<8x128xf32>
    %c0_15 = arith.constant 0 : index
    %c0_16 = arith.constant 0 : index
    %20 = vector.load %arg11[%c0_15, %c0_16] : memref<1x128xf32, #tpu.memory_space<vmem>>, vector<1x128xf32>
    %21 = vector.broadcast %20 : vector<1x128xf32> to vector<8x128xf32>
    %22 = arith.addf %19, %21 : vector<8x128xf32>
    %cst_17 = arith.constant 0.000000e+00 : f32
    %23 = vector.broadcast %cst_17 : f32 to vector<8x128xf32>
    %24 = arith.maximumf %22, %23 : vector<8x128xf32>
    %c0_18 = arith.constant 0 : index
    %c0_19 = arith.constant 0 : index
    %25 = vector.load %arg12[%c0_18, %c0_19] : memref<1x128xbf16, #tpu.memory_space<vmem>>, vector<1x128xbf16>
    %26 = arith.extf %25 : vector<1x128xbf16> to vector<1x128xf32>
    %27 = vector.broadcast %26 : vector<1x128xf32> to vector<8x128xf32>
    %28 = arith.mulf %24, %27 : vector<8x128xf32>
    %cst_20 = arith.constant dense<0.000000e+00> : vector<8xf32>
    %29 = vector.multi_reduction <add>, %28, %cst_20 [1] : vector<8x128xf32> to vector<8xf32>
    %30 = vector.shape_cast %29 : vector<8xf32> to vector<8x1xf32>
    %c0_21 = arith.constant 0 : index
    %c0_22 = arith.constant 0 : index
    %31 = vector.load %arg13[%c0_21, %c0_22] : memref<1x1xf32, #tpu.memory_space<vmem>>, vector<1x1xf32>
    %32 = vector.broadcast %31 : vector<1x1xf32> to vector<8x1xf32>
    %33 = arith.addf %30, %32 : vector<8x1xf32>
    %c0_23 = arith.constant 0 : index
    %c0_24 = arith.constant 0 : index
    %34 = vector.load %arg15[%c0_23, %c0_24] : memref<8x1xf32, #tpu.memory_space<vmem>>, vector<8x1xf32>
    tpu.vector_store %arg15[%c0_23, %c0_24], %33 {strides = array<i32>} : memref<8x1xf32, #tpu.memory_space<vmem>>, vector<8x1xf32>,
    %c0_25 = arith.constant 0 : index
    %c0_26 = arith.constant 0 : index
    %35 = vector.load %arg6[%c0_25, %c0_26] : memref<128x256xbf16, #tpu.memory_space<vmem>>, vector<128x256xbf16>
    %cst_27 = arith.constant dense<0.000000e+00> : vector<8x256xf32>
    %36 = tpu.matmul %17, %35, %cst_27 {dimension_numbers = #tpu.dot_dimension_numbers<[1], [0], [0], [1], [0, 0, 1, 1], [], []>} : vector<8x128xbf16>, vector<128x256xbf16>, vector<8x256xf32> -> vector<8x256xf32>
    %c0_28 = arith.constant 0 : index
    %c0_29 = arith.constant 0 : index
    %37 = vector.load %arg7[%c0_28, %c0_29] : memref<1x256xf32, #tpu.memory_space<vmem>>, vector<1x256xf32>
    %38 = vector.broadcast %37 : vector<1x256xf32> to vector<8x256xf32>
    %39 = arith.addf %36, %38 : vector<8x256xf32>
    %cst_30 = arith.constant 0.000000e+00 : f32
    %40 = vector.broadcast %cst_30 : f32 to vector<8x256xf32>
    %41 = arith.maximumf %39, %40 : vector<8x256xf32>
    %42 = arith.truncf %41 : vector<8x256xf32> to vector<8x256xbf16>
    %c0_31 = arith.constant 0 : index
    %c0_32 = arith.constant 0 : index
    %43 = vector.load %arg8[%c0_31, %c0_32] : memref<256x1024xbf16, #tpu.memory_space<vmem>>, vector<256x1024xbf16>
    %cst_33 = arith.constant dense<0.000000e+00> : vector<8x1024xf32>
    %44 = tpu.matmul %42, %43, %cst_33 {dimension_numbers = #tpu.dot_dimension_numbers<[1], [0], [0], [1], [0, 0, 1, 1], [], []>} : vector<8x256xbf16>, vector<256x1024xbf16>, vector<8x1024xf32> -> vector<8x1024xf32>
    %c0_34 = arith.constant 0 : index
    %c0_35 = arith.constant 0 : index
    %45 = vector.load %arg9[%c0_34, %c0_35] : memref<1x1024xf32, #tpu.memory_space<vmem>>, vector<1x1024xf32>
    %46 = vector.broadcast %45 : vector<1x1024xf32> to vector<8x1024xf32>
    %47 = arith.addf %44, %46 : vector<8x1024xf32>
    %c0_36 = arith.constant 0 : index
    %c0_37 = arith.constant 0 : index
    %48 = vector.load %arg14[%c0_36, %c0_37] : memref<8x1024xf32, #tpu.memory_space<vmem>>, vector<8x1024xf32>
    tpu.vector_store %arg14[%c0_36, %c0_37], %47 {strides = array<i32>} : memref<8x1024xf32, #tpu.memory_space<vmem>>, vector<8x1024xf32>,
    return
  }
  func.func @transform_0(%arg0: i32) -> (i32, i32) {
    %c0_i32 = arith.constant 0 : i32
    %c0_i32_0 = arith.constant 0 : i32
    return %arg0, %c0_i32 : i32, i32
  }
  func.func @transform_1(%arg0: i32) -> (i32, i32) {
    %c0_i32 = arith.constant 0 : i32
    %c0_i32_0 = arith.constant 0 : i32
    %c0_i32_1 = arith.constant 0 : i32
    return %c0_i32, %c0_i32_0 : i32, i32
  }
  func.func @transform_2(%arg0: i32) -> (i32, i32) {
    %c0_i32 = arith.constant 0 : i32
    %c0_i32_0 = arith.constant 0 : i32
    %c0_i32_1 = arith.constant 0 : i32
    return %c0_i32, %c0_i32_0 : i32, i32
  }
  func.func @transform_3(%arg0: i32) -> (i32, i32) {
    %c0_i32 = arith.constant 0 : i32
    %c0_i32_0 = arith.constant 0 : i32
    %c0_i32_1 = arith.constant 0 : i32
    return %c0_i32, %c0_i32_0 : i32, i32
  }
  func.func @transform_4(%arg0: i32) -> (i32, i32) {
    %c0_i32 = arith.constant 0 : i32
    %c0_i32_0 = arith.constant 0 : i32
    %c0_i32_1 = arith.constant 0 : i32
    return %c0_i32, %c0_i32_0 : i32, i32
  }
  func.func @transform_5(%arg0: i32) -> (i32, i32) {
    %c0_i32 = arith.constant 0 : i32
    %c0_i32_0 = arith.constant 0 : i32
    %c0_i32_1 = arith.constant 0 : i32
    return %c0_i32, %c0_i32_0 : i32, i32
  }
  func.func @transform_6(%arg0: i32) -> (i32, i32) {
    %c0_i32 = arith.constant 0 : i32
    %c0_i32_0 = arith.constant 0 : i32
    %c0_i32_1 = arith.constant 0 : i32
    return %c0_i32, %c0_i32_0 : i32, i32
  }
  func.func @transform_7(%arg0: i32) -> (i32, i32) {
    %c0_i32 = arith.constant 0 : i32
    %c0_i32_0 = arith.constant 0 : i32
    %c0_i32_1 = arith.constant 0 : i32
    return %c0_i32, %c0_i32_0 : i32, i32
  }
  func.func @transform_8(%arg0: i32) -> (i32, i32) {
    %c0_i32 = arith.constant 0 : i32
    %c0_i32_0 = arith.constant 0 : i32
    %c0_i32_1 = arith.constant 0 : i32
    return %c0_i32, %c0_i32_0 : i32, i32
  }
  func.func @transform_9(%arg0: i32) -> (i32, i32) {
    %c0_i32 = arith.constant 0 : i32
    %c0_i32_0 = arith.constant 0 : i32
    %c0_i32_1 = arith.constant 0 : i32
    return %c0_i32, %c0_i32_0 : i32, i32
  }
  func.func @transform_10(%arg0: i32) -> (i32, i32) {
    %c0_i32 = arith.constant 0 : i32
    %c0_i32_0 = arith.constant 0 : i32
    %c0_i32_1 = arith.constant 0 : i32
    return %c0_i32, %c0_i32_0 : i32, i32
  }
  func.func @transform_11(%arg0: i32) -> (i32, i32) {
    %c0_i32 = arith.constant 0 : i32
    %c0_i32_0 = arith.constant 0 : i32
    %c0_i32_1 = arith.constant 0 : i32
    return %c0_i32, %c0_i32_0 : i32, i32
  }
  func.func @transform_12(%arg0: i32) -> (i32, i32) {
    %c0_i32 = arith.constant 0 : i32
    %c0_i32_0 = arith.constant 0 : i32
    %c0_i32_1 = arith.constant 0 : i32
    return %c0_i32, %c0_i32_0 : i32, i32
  }
  func.func @transform_13(%arg0: i32) -> (i32, i32) {
    %c0_i32 = arith.constant 0 : i32
    %c0_i32_0 = arith.constant 0 : i32
    return %arg0, %c0_i32 : i32, i32
  }
  func.func @transform_14(%arg0: i32) -> (i32, i32) {
    %c0_i32 = arith.constant 0 : i32
    %c0_i32_0 = arith.constant 0 : i32
    return %arg0, %c0_i32 : i32, i32
  }
}

</mosaic_0001>

<bundles_post_ra>
// kernel: tpu_custom_call.1
= control target key start
LH: loop header
LB: loop body
LE: loop exit
PB: predicated region body
PF: predicated region fallthrough
CT: control target
= control target key end

     0   :  { %s4512_s0 = inlined_call_operand.hbm [shape: f32[8,1024], index: 0, kind: input, shape index: {}]   ;;  %s4513_s1 = inlined_call_operand.hbm [shape: bf16[1024,256], index: 1, kind: input, shape index: {}]   ;;  %s4514_s2 = inlined_call_operand.hbm [shape: f32[1,256], index: 2, kind: input, shape index: {}]   ;;  %s4515_s3 = inlined_call_operand.hbm [shape: bf16[256,128], index: 3, kind: input, shape index: {}]   ;;  %s4516_s4 = inlined_call_operand.vmem [shape: f32[1,128], index: 4, kind: input, shape index: {}]   ;;  %s4517_s5 = inlined_call_operand.hbm [shape: bf16[128,256], index: 5, kind: input, shape index: {}]   ;;  %s4518_s6 = inlined_call_operand.hbm [shape: f32[1,256], index: 6, kind: input, shape index: {}]   ;;  %s4519_s7 = inlined_call_operand.hbm [shape: bf16[256,1024], index: 7, kind: input, shape index: {}]   ;;  %s4520_s8 = inlined_call_operand.vmem [shape: f32[1,1024], index: 8, kind: input, shape index: {}]   ;;  %s4521_s9 = inlined_call_operand.hbm [shape: bf16[128,128], index: 9, kind: input, shape index: {}]   ;;  %s4522_s10 = inlined_call_operand.vmem [shape: f32[1,128], index: 10, kind: input, shape index: {}]   ;;  %s4523_s11 = inlined_call_operand.vmem [shape: bf16[1,128], index: 11, kind: input, shape index: {}]   ;;  %s4524_s12 = inlined_call_operand.<no memory space> [shape: f32[1,1], index: 12, kind: input, shape index: {}]   ;;  %s4525_s13 = inlined_call_operand.hbm [shape: f32[8,1024], index: 13, kind: output, shape index: {0}]   ;;  %s4526_s14 = inlined_call_operand.vmem [shape: f32[8,1], index: 14, kind: output, shape index: {1}]  }
   0x1   :  { %v20_v0 = vstv %s4524_s12 }
   0x2   :  { %21 = vst [vmem:[#allocation2] sm:$0x1] %v20_v0 }
   0x3   :  { %22 = vsyncpa [#allocation4], 0 }
   0x4   :  { %23 = vsyncpa [#allocation7], 0 }
   0x5   :  { %24 = vsyncpa [#allocation10], 0 }
   0x6   :  { %25 = vsyncpa [#allocation13], 0 }
   0x7   :  { %26 = vsyncpa [#allocation16], 0  ;;  %s43_s17 = sshll.u32 %s4513_s1, 4  ;;  %s44_s17 = int_to_ptr.hbm [resolvable:$true] %s43_s17 }
   0x8   :  { %27 = vsyncpa [#allocation5], 0  ;;  %s4310_s18 = smov [#allocation6]   ;;  %s67_s22 = sshll.u32 %s4515_s3, 4  ;;  %s68_s22 = int_to_ptr.hbm [resolvable:$true] %s67_s22 }
   0x9   :  { %s45_s19 = sshll.u32 %s4310_s18, 4  ;;  %s4311_s12 = smov 128   ;;  %s46_s19 = int_to_ptr.vmem [resolvable:$true] %s45_s19 }
   0xa   :  { %s4312_s23 = smov 8   ;;  %s4313_s24 = smov [#allocation9]  }
   0xb   :  { %51 = dma.hbm_to_vmem [thread:$0]  %s44_s17, 16384, %s46_s19, [#allocation7], %s4311_s12, %s4311_s12, %s4312_s23  }
   0xc   :  { %s69_s25 = sshll.u32 %s4313_s24, 4  ;;  %s4314_s1 = smov 64   ;;  %s70_s25 = int_to_ptr.vmem [resolvable:$true] %s69_s25 }
   0xd   :  { %s4315_s26 = smov 4   ;;  %s96_s3 = sshll.u32 %s4518_s6, 4  ;;  %s97_s3 = int_to_ptr.hbm [resolvable:$true] %s96_s3 }
   0xe   :  { %75 = dma.hbm_to_vmem [thread:$0]  %s68_s22, 2048, %s70_s25, [#allocation10], %s4314_s1, %s4314_s1, %s4315_s26  }
   0xf   :  { %s4316_s29 = smov [#allocation12]   ;;  %s33_s17 = sshll.u32 %s4512_s0, 4  ;;  %s34_s17 = int_to_ptr.hbm [resolvable:$true] %s33_s17 }
  0x10   :  { %s98_s30 = sshll.u32 %s4316_s29, 4  ;;  %s4317_s18 = smov [#allocation3]   ;;  %s99_s30 = int_to_ptr.vmem [resolvable:$true] %s98_s30 }
  0x11   :  { %101 = dma.hbm_to_vmem [thread:$0]  %s97_s3, 32, %s99_s30, [#allocation13]  }
  0x12   :  { %s35_s19 = sshll.u32 %s4317_s18, 4  ;;  %s57_s22 = sshll.u32 %s4514_s2, 4  ;;  %s36_s19 = int_to_ptr.vmem [resolvable:$true] %s35_s19  ;;  %s58_s22 = int_to_ptr.hbm [resolvable:$true] %s57_s22 }
  0x13   :  { %38 = dma.hbm_to_vmem [thread:$0]  %s34_s17, 1024, %s36_s19, [#allocation4]  }
  0x14   :  { %s82_s25 = sshll.u32 %s4517_s5, 4  ;;  %s4318_s27 = smov [#allocation8]   ;;  %s83_s25 = int_to_ptr.hbm [resolvable:$true] %s82_s25 }
  0x15   :  { %s59_s28 = sshll.u32 %s4318_s27, 4  ;;  %s4319_s0 = smov [#allocation11]   ;;  %s60_s28 = int_to_ptr.vmem [resolvable:$true] %s59_s28 }
  0x16   :  { %62 = dma.hbm_to_vmem [thread:$0]  %s58_s22, 32, %s60_s28, [#allocation7]  }
  0x17   :  { %s84_s3 = sshll.u32 %s4319_s0, 4  ;;  %s106_s15 = sshll.u32 %s4519_s7, 4  ;;  %s85_s3 = int_to_ptr.vmem [resolvable:$true] %s84_s3  ;;  %s107_s15 = int_to_ptr.hbm [resolvable:$true] %s106_s15 }
  0x18   :  { %90 = dma.hbm_to_vmem [thread:$0]  %s83_s25, 2048, %s85_s3, [#allocation10], %s4311_s12, %s4311_s12, %s4312_s23  }
  0x19   :  { %s4320_s2 = smov [#allocation14]   ;;  %s121_s18 = sshll.u32 %s4521_s9, 4  ;;  %s122_s18 = int_to_ptr.hbm [resolvable:$true] %s121_s18 }
  0x1a   :  { %s108_s16 = sshll.u32 %s4320_s2, 4  ;;  %s4321_s19 = smov 512   ;;  %s109_s16 = int_to_ptr.vmem [resolvable:$true] %s108_s16 }
  0x1b   :  { %s4322_s20 = smov 32   ;;  %s4323_s21 = smov [#allocation15]  }
  0x1c   :  { %114 = dma.hbm_to_vmem [thread:$0]  %s107_s15, 16384, %s109_s16, [#allocation13], %s4321_s19, %s4321_s19, %s4322_s20  }
  0x1d   :  { %s123_s22 = sshll.u32 %s4323_s21, 4  ;;  %s124_s22 = int_to_ptr.vmem [resolvable:$true] %s123_s22 }
  0x1e   :  { %129 = dma.hbm_to_vmem [thread:$0]  %s122_s18, 1024, %s124_s22, [#allocation16], %s4314_s1, %s4314_s1, %s4315_s26  }
  0x1f   :  { %4298 = dma.done.wait [#allocation4], 1024  }
  0x20   :  { %4299 = vsyncadd [#allocation4], 4294966272 }
  0x21   :  { %4300 = dma.done.wait [#allocation7], 16416  }
  0x22   :  { %4301 = vsyncadd [#allocation7], 4294950880 }
  0x23   :  { %4302 = dma.done.wait [#allocation10], 4096  }
  0x24   :  { %4303 = vsyncadd [#allocation10], 4294963200 }
  0x25   :  { %4304 = dma.done.wait [#allocation13], 16416  }
  0x26   :  { %4305 = vsyncadd [#allocation13], 4294950880 }
  0x27   :  { %4306 = dma.done.wait [#allocation16], 1024  }
  0x28   :  { %4307 = vsyncadd [#allocation16], 4294966272  ;;  %v2642_v1 = vld [vmem:[#allocation6 + $0x70] sm:$0xf]  ;;  %v3783_v2 = vld [vmem:[#allocation6 + $0x74] sm:$0xf0] }
  0x29   :  { %v2706_v3 = vld [vmem:[#allocation6 + $0xf0] sm:$0xf]  ;;  %v2643_v4 = vor.u32 %v3783_v2, %v2642_v1  ;;  %v3799_v5 = vld [vmem:[#allocation6 + $0xf4] sm:$0xf0]  ;;  %v2634_v12 = vld [vmem:[#allocation6 + $0x60] sm:$0xf] }
  0x2a   :  { %v2770_v6 = vld [vmem:[#allocation6 + $0x170] sm:$0xf]  ;;  %v3815_v7 = vld [vmem:[#allocation6 + $0x174] sm:$0xf0]  ;;  %v2707_v8 = vor.u32 %v3799_v5, %v2706_v3  ;;  %v3781_v14 = vld [vmem:[#allocation6 + $0x64] sm:$0xf0] }
  0x2b   :  { %v2771_v9 = vor.u32 %v3815_v7, %v2770_v6  ;;  %v2834_v10 = vld [vmem:[#allocation6 + $0x1f0] sm:$0xf]  ;;  %v3831_v11 = vld [vmem:[#allocation6 + $0x1f4] sm:$0xf0]  ;;  %958 = vmatpush.bf16.msra.mxu0 %v2643_v4  ;;  %v2698_v15 = vld [vmem:[#allocation6 + $0xe0] sm:$0xf]  ;;  %v2635_v17 = vor.u32 %v3781_v14, %v2634_v12 }
  0x2c   :  { %v2835_v13 = vor.u32 %v3831_v11, %v2834_v10  ;;  %v3797_v16 = vld [vmem:[#allocation6 + $0xe4] sm:$0xf0]  ;;  %971 = vmatpush.bf16.msra.mxu1 %v2707_v8  ;;  %v2762_v19 = vld [vmem:[#allocation6 + $0x160] sm:$0xf]  ;;  %v2626_v24 = vld [vmem:[#allocation6 + $0x50] sm:$0xf] }
  0x2d   :  { %984 = vmatpush.bf16.msra.mxu2 %v2771_v9  ;;  %v2699_v18 = vor.u32 %v3797_v16, %v2698_v15  ;;  %v3813_v20 = vld [vmem:[#allocation6 + $0x164] sm:$0xf0]  ;;  %v2826_v21 = vld [vmem:[#allocation6 + $0x1e0] sm:$0xf]  ;;  %v3779_v25 = vld [vmem:[#allocation6 + $0x54] sm:$0xf0] }
  0x2e   :  { %997 = vmatpush.bf16.msra.mxu3 %v2835_v13  ;;  %v2763_v22 = vor.u32 %v3813_v20, %v2762_v19  ;;  %v3829_v23 = vld [vmem:[#allocation6 + $0x1e4] sm:$0xf0]  ;;  %v2690_v27 = vld [vmem:[#allocation6 + $0xd0] sm:$0xf]  ;;  %v3795_v28 = vld [vmem:[#allocation6 + $0xd4] sm:$0xf0]  ;;  %v2627_v30 = vor.u32 %v3779_v25, %v2626_v24 }
  0x2f   :  { %v2827_v26 = vor.u32 %v3829_v23, %v2826_v21  ;;  %v2754_v29 = vld [vmem:[#allocation6 + $0x150] sm:$0xf]  ;;  %959 = vmatpush.bf16.msra.mxu0 %v2635_v17  ;;  %v3811_v31 = vld [vmem:[#allocation6 + $0x154] sm:$0xf0]  ;;  %v2691_v34 = vor.u32 %v3795_v28, %v2690_v27  ;;  %v2618_v36 = vld [vmem:[#allocation6 + $0x40] sm:$0xf] }
  0x30   :  { %v2818_v32 = vld [vmem:[#allocation6 + $0x1d0] sm:$0xf]  ;;  %v3827_v33 = vld [vmem:[#allocation6 + $0x1d4] sm:$0xf0]  ;;  %972 = vmatpush.bf16.msra.mxu1 %v2699_v18  ;;  %v2755_v35 = vor.u32 %v3811_v31, %v2754_v29  ;;  %v3777_v37 = vld [vmem:[#allocation6 + $0x44] sm:$0xf0] }
  0x31   :  { %985 = vmatpush.bf16.msra.mxu2 %v2763_v22  ;;  %v2682_v38 = vld [vmem:[#allocation6 + $0xc0] sm:$0xf]  ;;  %v2819_v39 = vor.u32 %v3827_v33, %v2818_v32  ;;  %v3793_v40 = vld [vmem:[#allocation6 + $0xc4] sm:$0xf0]  ;;  %v2619_v45 = vor.u32 %v3777_v37, %v2618_v36  ;;  %v2610_v48 = vld [vmem:[#allocation6 + $0x30] sm:$0xf] }
  0x32   :  { %998 = vmatpush.bf16.msra.mxu3 %v2827_v26  ;;  %v2746_v41 = vld [vmem:[#allocation6 + $0x140] sm:$0xf]  ;;  %v3809_v42 = vld [vmem:[#allocation6 + $0x144] sm:$0xf0]  ;;  %v2683_v46 = vor.u32 %v3793_v40, %v2682_v38  ;;  %v3775_v49 = vld [vmem:[#allocation6 + $0x34] sm:$0xf0] }
  0x33   :  { %v2810_v43 = vld [vmem:[#allocation6 + $0x1c0] sm:$0xf]  ;;  %v3825_v44 = vld [vmem:[#allocation6 + $0x1c4] sm:$0xf0]  ;;  %960 = vmatpush.bf16.msra.mxu0 %v2627_v30  ;;  %v2747_v47 = vor.u32 %v3809_v42, %v2746_v41  ;;  %v2674_v50 = vld [vmem:[#allocation6 + $0xb0] sm:$0xf]  ;;  %v2611_v57 = vor.u32 %v3775_v49, %v2610_v48 }
  0x34   :  { %973 = vmatpush.bf16.msra.mxu1 %v2691_v34  ;;  %v2811_v51 = vor.u32 %v3825_v44, %v2810_v43  ;;  %v3791_v52 = vld [vmem:[#allocation6 + $0xb4] sm:$0xf0]  ;;  %v2738_v53 = vld [vmem:[#allocation6 + $0x130] sm:$0xf]  ;;  %v2602_v60 = vld [vmem:[#allocation6 + $0x20] sm:$0xf] }
  0x35   :  { %986 = vmatpush.bf16.msra.mxu2 %v2755_v35  ;;  %v3807_v54 = vld [vmem:[#allocation6 + $0x134] sm:$0xf0]  ;;  %v2802_v55 = vld [vmem:[#allocation6 + $0x1b0] sm:$0xf]  ;;  %v2675_v58 = vor.u32 %v3791_v52, %v2674_v50  ;;  %v3773_v61 = vld [vmem:[#allocation6 + $0x24] sm:$0xf0] }
  0x36   :  { %999 = vmatpush.bf16.msra.mxu3 %v2819_v39  ;;  %v3823_v56 = vld [vmem:[#allocation6 + $0x1b4] sm:$0xf0]  ;;  %v2739_v59 = vor.u32 %v3807_v54, %v2738_v53  ;;  %v2666_v62 = vld [vmem:[#allocation6 + $0xa0] sm:$0xf]  ;;  %v3789_v0 = vld [vmem:[#allocation6 + $0xa4] sm:$0xf0]  ;;  %v2603_v5 = vor.u32 %v3773_v61, %v2602_v60 }
  0x37   :  { %961 = vmatpush.bf16.msra.mxu0 %v2619_v45  ;;  %v2803_v63 = vor.u32 %v3823_v56, %v2802_v55  ;;  %v2730_v1 = vld [vmem:[#allocation6 + $0x120] sm:$0xf]  ;;  %v3805_v2 = vld [vmem:[#allocation6 + $0x124] sm:$0xf0]  ;;  %v2667_v6 = vor.u32 %v3789_v0, %v2666_v62  ;;  %v2594_v8 = vld [vmem:[#allocation6 + $0x10] sm:$0xf] }
  0x38   :  { %974 = vmatpush.bf16.msra.mxu1 %v2683_v46  ;;  %v2794_v3 = vld [vmem:[#allocation6 + $0x1a0] sm:$0xf]  ;;  %v3821_v4 = vld [vmem:[#allocation6 + $0x1a4] sm:$0xf0]  ;;  %v2731_v7 = vor.u32 %v3805_v2, %v2730_v1  ;;  %v3771_v9 = vld [vmem:[#allocation6 + $0x14] sm:$0xf0] }
  0x39   :  { %987 = vmatpush.bf16.msra.mxu2 %v2747_v47  ;;  %v2658_v10 = vld [vmem:[#allocation6 + $0x90] sm:$0xf]  ;;  %v2795_v11 = vor.u32 %v3821_v4, %v2794_v3  ;;  %v3787_v12 = vld [vmem:[#allocation6 + $0x94] sm:$0xf0]  ;;  %v2595_v17 = vor.u32 %v3771_v9, %v2594_v8  ;;  %v2586_v18 = vld [vmem:[#allocation6] sm:$0xf] }
  0x3a   :  { %1000 = vmatpush.bf16.msra.mxu3 %v2811_v51  ;;  %v2722_v13 = vld [vmem:[#allocation6 + $0x110] sm:$0xf]  ;;  %v3803_v14 = vld [vmem:[#allocation6 + $0x114] sm:$0xf0]  ;;  %v3769_v19 = vld [vmem:[#allocation6 + $0x4] sm:$0xf0]  ;;  %v2659_v20 = vor.u32 %v3787_v12, %v2658_v10 }
  0x3b   :  { %962 = vmatpush.bf16.msra.mxu0 %v2611_v57  ;;  %v2786_v15 = vld [vmem:[#allocation6 + $0x190] sm:$0xf]  ;;  %v3819_v16 = vld [vmem:[#allocation6 + $0x194] sm:$0xf0]  ;;  %v2723_v21 = vor.u32 %v3803_v14, %v2722_v13  ;;  %v2650_v22 = vld [vmem:[#allocation6 + $0x80] sm:$0xf]  ;;  %v2587_v32 = vor.u32 %v3769_v19, %v2586_v18 }
  0x3c   :  { %975 = vmatpush.bf16.msra.mxu1 %v2675_v58  ;;  %v3785_v23 = vld [vmem:[#allocation6 + $0x84] sm:$0xf0]  ;;  %v2714_v24 = vld [vmem:[#allocation6 + $0x100] sm:$0xf]  ;;  %v2787_v25 = vor.u32 %v3819_v16, %v2786_v15  ;;  %v2898_v29 = vld [vmem:[#allocation6 + $0x270] sm:$0xf] }
  0x3d   :  { %988 = vmatpush.bf16.msra.mxu2 %v2739_v59  ;;  %v3801_v26 = vld [vmem:[#allocation6 + $0x104] sm:$0xf0]  ;;  %v2778_v27 = vld [vmem:[#allocation6 + $0x180] sm:$0xf]  ;;  %v3847_v30 = vld [vmem:[#allocation6 + $0x274] sm:$0xf0]  ;;  %v2651_v36 = vor.u32 %v3785_v23, %v2650_v22 }
  0x3e   :  { %1001 = vmatpush.bf16.msra.mxu3 %v2803_v63  ;;  %v3817_v28 = vld [vmem:[#allocation6 + $0x184] sm:$0xf0]  ;;  %v2962_v31 = vld [vmem:[#allocation6 + $0x2f0] sm:$0xf]  ;;  %v3863_v33 = vld [vmem:[#allocation6 + $0x2f4] sm:$0xf0]  ;;  %v2715_v37 = vor.u32 %v3801_v26, %v2714_v24  ;;  %v2899_v41 = vor.u32 %v3847_v30, %v2898_v29 }
  0x3f   :  { %963 = vmatpush.bf16.msra.mxu0 %v2603_v5  ;;  %v3026_v34 = vld [vmem:[#allocation6 + $0x370] sm:$0xf]  ;;  %v3879_v35 = vld [vmem:[#allocation6 + $0x374] sm:$0xf0]  ;;  %v2779_v40 = vor.u32 %v3817_v28, %v2778_v27  ;;  %v2963_v42 = vor.u32 %v3863_v33, %v2962_v31  ;;  %v2890_v44 = vld [vmem:[#allocation6 + $0x260] sm:$0xf] }
  0x40   :  { %976 = vmatpush.bf16.msra.mxu1 %v2667_v6  ;;  %v3090_v38 = vld [vmem:[#allocation6 + $0x3f0] sm:$0xf]  ;;  %v3895_v39 = vld [vmem:[#allocation6 + $0x3f4] sm:$0xf0]  ;;  %v3027_v43 = vor.u32 %v3879_v35, %v3026_v34  ;;  %v3845_v45 = vld [vmem:[#allocation6 + $0x264] sm:$0xf0] }
  0x41   :  { %989 = vmatpush.bf16.msra.mxu2 %v2731_v7  ;;  %v2954_v46 = vld [vmem:[#allocation6 + $0x2e0] sm:$0xf]  ;;  %v3091_v47 = vor.u32 %v3895_v39, %v3090_v38  ;;  %v3861_v48 = vld [vmem:[#allocation6 + $0x2e4] sm:$0xf0]  ;;  %v170_v53 = vld [vmem:[#allocation3 + $0x10] sm:$0xff]  ;;  %v2891_v54 = vor.u32 %v3845_v45, %v2890_v44  ;;  %vm1423_vm0 = vcmask 7168  }
  0x42   :  { %1002 = vmatpush.bf16.msra.mxu3 %v2795_v11  ;;  %v3018_v49 = vld [vmem:[#allocation6 + $0x360] sm:$0xf]  ;;  %v3877_v50 = vld [vmem:[#allocation6 + $0x364] sm:$0xf0]  ;;  %v2882_v55 = vld [vmem:[#allocation6 + $0x250] sm:$0xf]  ;;  %v4439_v58 = vpack.c.bf16 %v170_v53, %v170_v53  ;;  %v2955_v59 = vor.u32 %v3861_v48, %v2954_v46 }
  0x43   :  { %964 = vmatpush.bf16.msra.mxu0 %v2595_v17  ;;  %v3082_v51 = vld [vmem:[#allocation6 + $0x3e0] sm:$0xf]  ;;  %v3893_v52 = vld [vmem:[#allocation6 + $0x3e4] sm:$0xf0]  ;;  %v3843_v56 = vld [vmem:[#allocation6 + $0x254] sm:$0xf0]  ;;  %v3019_v60 = vor.u32 %v3877_v50, %v3018_v49 }
  0x44   :  { %977 = vmatpush.bf16.msra.mxu1 %v2659_v20  ;;  %v2946_v57 = vld [vmem:[#allocation6 + $0x2d0] sm:$0xf]  ;;  %v3859_v61 = vld [vmem:[#allocation6 + $0x2d4] sm:$0xf0]  ;;  %v3083_v0 = vor.u32 %v3893_v52, %v3082_v51  ;;  %v168_v1 = vld [vmem:[#allocation3] sm:$0xff]  ;;  %v2883_v9 = vor.u32 %v3843_v56, %v2882_v55  ;;  %s2566_s27 = sshll.u32 %s4525_s13, 4  ;;  %s2567_s27 = int_to_ptr.hbm [resolvable:$true] %s2566_s27 }
  0x45   :  { %990 = vmatpush.bf16.msra.mxu2 %v2723_v21  ;;  %v3010_v62 = vld [vmem:[#allocation6 + $0x350] sm:$0xf]  ;;  %v3875_v63 = vld [vmem:[#allocation6 + $0x354] sm:$0xf0]  ;;  %v169_v3 = vld [vmem:[#allocation3 + $0x8] sm:$0xff]  ;;  %v4442_v6 = vpack.c.bf16 %v168_v1, %v168_v1  ;;  %v2947_v10 = vor.u32 %v3859_v61, %v2946_v57 }
  0x46   :  { %1003 = vmatpush.bf16.msra.mxu3 %v2787_v25  ;;  %v171_v2 = vld [vmem:[#allocation3 + $0x18] sm:$0xff]  ;;  %v3074_v4 = vld [vmem:[#allocation6 + $0x3d0] sm:$0xf]  ;;  %v4446_v8 = vpack.c.bf16 %v169_v3, %v169_v3  ;;  %v3011_v11 = vor.u32 %v3875_v63, %v3010_v62  ;;  %v2874_v12 = vld [vmem:[#allocation6 + $0x240] sm:$0xf] }
  0x47   :  { %965 = vmatpush.bf16.msra.mxu0 %v2587_v32  ;;  %v3891_v5 = vld [vmem:[#allocation6 + $0x3d4] sm:$0xf0]  ;;  %v4444_v7 = vpack.c.bf16 %v171_v2, %v171_v2  ;;  %v3841_v13 = vld [vmem:[#allocation6 + $0x244] sm:$0xf0]  ;;  %v2938_v14 = vld [vmem:[#allocation6 + $0x2c0] sm:$0xf] }
  0x48   :  { %978 = vmatpush.bf16.msra.mxu1 %v2651_v36  ;;  %v3075_v15 = vor.u32 %v3891_v5, %v3074_v4  ;;  %v3857_v16 = vld [vmem:[#allocation6 + $0x2c4] sm:$0xf0]  ;;  %v3002_v17 = vld [vmem:[#allocation6 + $0x340] sm:$0xf]  ;;  %v2875_v21 = vor.u32 %v3841_v13, %v2874_v12  ;;  %v2866_v24 = vld [vmem:[#allocation6 + $0x230] sm:$0xf] }
  0x49   :  { %991 = vmatpush.bf16.msra.mxu2 %v2715_v37  ;;  %v3873_v18 = vld [vmem:[#allocation6 + $0x344] sm:$0xf0]  ;;  %v3066_v19 = vld [vmem:[#allocation6 + $0x3c0] sm:$0xf]  ;;  %v2939_v22 = vor.u32 %v3857_v16, %v2938_v14  ;;  %v3839_v25 = vld [vmem:[#allocation6 + $0x234] sm:$0xf0] }
  0x4a   :  { %1004 = vmatpush.bf16.msra.mxu3 %v2779_v40  ;;  %966 = vmatmul.bf16.vlgmr.msra.gmra.mxu0 %v4442_v6  ;;  %v3889_v20 = vld [vmem:[#allocation6 + $0x3c4] sm:$0xf0]  ;;  %v3003_v23 = vor.u32 %v3873_v18, %v3002_v17  ;;  %v2930_v26 = vld [vmem:[#allocation6 + $0x2b0] sm:$0xf]  ;;  %v3855_v28 = vld [vmem:[#allocation6 + $0x2b4] sm:$0xf0]  ;;  %v2867_v33 = vor.u32 %v3839_v25, %v2866_v24 }
  0x4b   :  { %1010 = vmatpush.bf16.msrb.mxu0 %v2899_v41  ;;  %979 = vmatmul.bf16.vlgmr.msra.gmra.mxu1 %v4446_v8  ;;  %v3067_v27 = vor.u32 %v3889_v20, %v3066_v19  ;;  %v2994_v29 = vld [vmem:[#allocation6 + $0x330] sm:$0xf]  ;;  %v3871_v30 = vld [vmem:[#allocation6 + $0x334] sm:$0xf0]  ;;  %v2931_v34 = vor.u32 %v3855_v28, %v2930_v26  ;;  %v2858_v36 = vld [vmem:[#allocation6 + $0x220] sm:$0xf] }
  0x4c   :  { %1023 = vmatpush.bf16.msrb.mxu1 %v2963_v42  ;;  %992 = vmatmul.bf16.vlgmr.msra.gmra.mxu2 %v4439_v58  ;;  %v3058_v31 = vld [vmem:[#allocation6 + $0x3b0] sm:$0xf]  ;;  %v3887_v32 = vld [vmem:[#allocation6 + $0x3b4] sm:$0xf0]  ;;  %v2995_v35 = vor.u32 %v3871_v30, %v2994_v29  ;;  %v3837_v37 = vld [vmem:[#allocation6 + $0x224] sm:$0xf0] }
  0x4d   :  { %1036 = vmatpush.bf16.msrb.mxu2 %v3027_v43  ;;  %1005 = vmatmul.bf16.vlgmr.msra.gmra.mxu3 %v4444_v7  ;;  %v2922_v38 = vld [vmem:[#allocation6 + $0x2a0] sm:$0xf]  ;;  %v3059_v39 = vor.u32 %v3887_v32, %v3058_v31  ;;  %v3853_v40 = vld [vmem:[#allocation6 + $0x2a4] sm:$0xf0]  ;;  %v2859_v45 = vor.u32 %v3837_v37, %v2858_v36  ;;  %v2850_v48 = vld [vmem:[#allocation6 + $0x210] sm:$0xf] }
  0x4e   :  { %1049 = vmatpush.bf16.msrb.mxu3 %v3091_v47  ;;  %v2986_v41 = vld [vmem:[#allocation6 + $0x320] sm:$0xf]  ;;  %v3869_v42 = vld [vmem:[#allocation6 + $0x324] sm:$0xf0]  ;;  %v2923_v46 = vor.u32 %v3853_v40, %v2922_v38  ;;  %v3835_v49 = vld [vmem:[#allocation6 + $0x214] sm:$0xf0] }
  0x4f   :  { %1011 = vmatpush.bf16.msrb.mxu0 %v2891_v54  ;;  %v3050_v43 = vld [vmem:[#allocation6 + $0x3a0] sm:$0xf]  ;;  %v3885_v44 = vld [vmem:[#allocation6 + $0x3a4] sm:$0xf0]  ;;  %v2987_v47 = vor.u32 %v3869_v42, %v2986_v41  ;;  %v2914_v50 = vld [vmem:[#allocation6 + $0x290] sm:$0xf]  ;;  %v2851_v57 = vor.u32 %v3835_v49, %v2850_v48 }
  0x50   :  { %1024 = vmatpush.bf16.msrb.mxu1 %v2955_v59  ;;  %v3051_v51 = vor.u32 %v3885_v44, %v3050_v43  ;;  %v3851_v52 = vld [vmem:[#allocation6 + $0x294] sm:$0xf0]  ;;  %v2978_v53 = vld [vmem:[#allocation6 + $0x310] sm:$0xf]  ;;  %v2842_v59 = vld [vmem:[#allocation6 + $0x200] sm:$0xf] }
  0x51   :  { %1037 = vmatpush.bf16.msrb.mxu2 %v3019_v60  ;;  %v3867_v54 = vld [vmem:[#allocation6 + $0x314] sm:$0xf0]  ;;  %v3042_v55 = vld [vmem:[#allocation6 + $0x390] sm:$0xf]  ;;  %v3833_v60 = vld [vmem:[#allocation6 + $0x204] sm:$0xf0]  ;;  %v2915_v61 = vor.u32 %v3851_v52, %v2914_v50 }
  0x52   :  { %1050 = vmatpush.bf16.msrb.mxu3 %v3083_v0  ;;  %v3883_v56 = vld [vmem:[#allocation6 + $0x394] sm:$0xf0]  ;;  %v2979_v62 = vor.u32 %v3867_v54, %v2978_v53  ;;  %v2906_v63 = vld [vmem:[#allocation6 + $0x280] sm:$0xf]  ;;  %v3849_v0 = vld [vmem:[#allocation6 + $0x284] sm:$0xf0]  ;;  %v2843_v12 = vor.u32 %v3833_v60, %v2842_v59 }
  0x53   :  { %1012 = vmatpush.bf16.msrb.mxu0 %v2883_v9  ;;  %v2970_v1 = vld [vmem:[#allocation6 + $0x300] sm:$0xf]  ;;  %v3043_v2 = vor.u32 %v3883_v56, %v3042_v55  ;;  %v3865_v3 = vld [vmem:[#allocation6 + $0x304] sm:$0xf0]  ;;  %v3782_v9 = vld [vmem:[#allocation6 + $0x74] sm:$0xf]  ;;  %v2907_v16 = vor.u32 %v3849_v0, %v2906_v63 }
  0x54   :  { %1025 = vmatpush.bf16.msrb.mxu1 %v2947_v10  ;;  %v3034_v4 = vld [vmem:[#allocation6 + $0x380] sm:$0xf]  ;;  %v3881_v5 = vld [vmem:[#allocation6 + $0x384] sm:$0xf0]  ;;  %v2644_v10 = vld [vmem:[#allocation6 + $0x78] sm:$0xf0]  ;;  %v2971_v17 = vor.u32 %v3865_v3, %v2970_v1 }
  0x55   :  { %1038 = vmatpush.bf16.msrb.mxu2 %v3011_v11  ;;  %v3798_v11 = vld [vmem:[#allocation6 + $0xf4] sm:$0xf]  ;;  %v2708_v13 = vld [vmem:[#allocation6 + $0xf8] sm:$0xf0]  ;;  %v3780_v25 = vld [vmem:[#allocation6 + $0x64] sm:$0xf] }
  0x56   :  { %1051 = vmatpush.bf16.msrb.mxu3 %v3075_v15  ;;  %v3814_v14 = vld [vmem:[#allocation6 + $0x174] sm:$0xf]  ;;  %v2772_v15 = vld [vmem:[#allocation6 + $0x178] sm:$0xf0]  ;;  %v2711_v26 = vor.u32 %v3798_v11, %v2708_v13  ;;  %v2636_v28 = vld [vmem:[#allocation6 + $0x68] sm:$0xf0] }
  0x57   :  { %1013 = vmatpush.bf16.msrb.mxu0 %v2875_v21  ;;  %v3830_v18 = vld [vmem:[#allocation6 + $0x1f4] sm:$0xf]  ;;  %v2836_v19 = vld [vmem:[#allocation6 + $0x1f8] sm:$0xf0]  ;;  %v3035_v21 = vor.u32 %v3881_v5, %v3034_v4  ;;  %v3796_v29 = vld [vmem:[#allocation6 + $0xe4] sm:$0xf]  ;;  %v2639_v40 = vor.u32 %v3780_v25, %v2636_v28 }
  0x58   :  { %1026 = vmatpush.bf16.msrb.mxu1 %v2939_v22  ;;  %v174_v20 = vld [vmem:[#allocation3 + $0x30] sm:$0xff]  ;;  %v2647_v22 = vor.u32 %v3782_v9, %v2644_v10  ;;  %v175_v24 = vld [vmem:[#allocation3 + $0x38] sm:$0xff]  ;;  %v173_v30 = vld [vmem:[#allocation3 + $0x28] sm:$0xff]  ;;  %v2839_v31 = vor.u32 %v3830_v18, %v2836_v19 }
  0x59   :  { %1039 = vmatpush.bf16.msrb.mxu2 %v3003_v23  ;;  %v172_v23 = vld [vmem:[#allocation3 + $0x20] sm:$0xff]  ;;  %v4451_v32 = vpack.c.bf16 %v174_v20, %v174_v20  ;;  %v4455_v37 = vpack.c.bf16 %v175_v24, %v175_v24  ;;  %v4457_v41 = vpack.c.bf16 %v173_v30, %v173_v30  ;;  %v3778_v44 = vld [vmem:[#allocation6 + $0x54] sm:$0xf]  ;;  %v2692_v48 = vld [vmem:[#allocation6 + $0xd8] sm:$0xf0] }
  0x5a   :  { %1052 = vmatpush.bf16.msrb.mxu3 %v3067_v27  ;;  %v2775_v27 = vor.u32 %v3814_v14, %v2772_v15  ;;  %v4453_v36 = vpack.c.bf16 %v172_v23, %v172_v23  ;;  %v3828_v38 = vld [vmem:[#allocation6 + $0x1e4] sm:$0xf]  ;;  %v3810_v49 = vld [vmem:[#allocation6 + $0x154] sm:$0xf]  ;;  %v2756_v50 = vld [vmem:[#allocation6 + $0x158] sm:$0xf0] }
  0x5b   :  { %1014 = vmatpush.bf16.msrb.mxu0 %v2867_v33  ;;  %v2700_v33 = vld [vmem:[#allocation6 + $0xe8] sm:$0xf0]  ;;  %v2820_v52 = vld [vmem:[#allocation6 + $0x1d8] sm:$0xf0]  ;;  %v2759_v55 = vor.u32 %v3810_v49, %v2756_v50  ;;  %v3776_v56 = vld [vmem:[#allocation6 + $0x44] sm:$0xf] }
  0x5c   :  { %1027 = vmatpush.bf16.msrb.mxu1 %v2931_v34  ;;  %v3812_v34 = vld [vmem:[#allocation6 + $0x164] sm:$0xf]  ;;  %v2703_v42 = vor.u32 %v3796_v29, %v2700_v33  ;;  %v2748_v63 = vld [vmem:[#allocation6 + $0x148] sm:$0xf0]  ;;  %v3774_v5 = vld [vmem:[#allocation6 + $0x34] sm:$0xf] }
  0x5d   :  { %1040 = vmatpush.bf16.msrb.mxu2 %v2995_v35  ;;  %v2764_v35 = vld [vmem:[#allocation6 + $0x168] sm:$0xf0]  ;;  %v3792_v59 = vld [vmem:[#allocation6 + $0xc4] sm:$0xf]  ;;  %v2612_v9 = vld [vmem:[#allocation6 + $0x38] sm:$0xf0] }
  0x5e   :  { %1053 = vmatpush.bf16.msrb.mxu3 %v3059_v39  ;;  %v2828_v39 = vld [vmem:[#allocation6 + $0x1e8] sm:$0xf0]  ;;  %v2767_v43 = vor.u32 %v3812_v34, %v2764_v35  ;;  %v3824_v0 = vld [vmem:[#allocation6 + $0x1c4] sm:$0xf]  ;;  %v3790_v10 = vld [vmem:[#allocation6 + $0xb4] sm:$0xf] }
  0x5f   :  { %1015 = vmatpush.bf16.msrb.mxu0 %v2859_v45  ;;  %v2628_v45 = vld [vmem:[#allocation6 + $0x58] sm:$0xf0]  ;;  %v2812_v1 = vld [vmem:[#allocation6 + $0x1c8] sm:$0xf0]  ;;  %v3806_v13 = vld [vmem:[#allocation6 + $0x134] sm:$0xf] }
  0x60   :  { %1028 = vmatpush.bf16.msrb.mxu1 %v2923_v46  ;;  %v3794_v46 = vld [vmem:[#allocation6 + $0xd4] sm:$0xf]  ;;  %v2631_v53 = vor.u32 %v3778_v44, %v2628_v45  ;;  %v2815_v11 = vor.u32 %v3824_v0, %v2812_v1  ;;  %v2740_v14 = vld [vmem:[#allocation6 + $0x138] sm:$0xf0]  ;;  %v3772_v20 = vld [vmem:[#allocation6 + $0x24] sm:$0xf] }
  0x61   :  { %1041 = vmatpush.bf16.msrb.mxu2 %v2987_v47  ;;  %v2831_v47 = vor.u32 %v3828_v38, %v2828_v39  ;;  %v2695_v54 = vor.u32 %v3794_v46, %v2692_v48  ;;  %v3822_v15 = vld [vmem:[#allocation6 + $0x1b4] sm:$0xf]  ;;  %v2743_v19 = vor.u32 %v3806_v13, %v2740_v14  ;;  %v2668_v24 = vld [vmem:[#allocation6 + $0xa8] sm:$0xf0]  ;;  %v3804_v25 = vld [vmem:[#allocation6 + $0x124] sm:$0xf] }
  0x62   :  { %1054 = vmatpush.bf16.msrb.mxu3 %v3051_v51  ;;  %v3826_v51 = vld [vmem:[#allocation6 + $0x1d4] sm:$0xf]  ;;  %v2796_v28 = vld [vmem:[#allocation6 + $0x1a8] sm:$0xf0]  ;;  %v2596_v34 = vld [vmem:[#allocation6 + $0x18] sm:$0xf0] }
  0x63   :  { %1016 = vmatpush.bf16.msrb.mxu0 %v2851_v57  ;;  %v2620_v57 = vld [vmem:[#allocation6 + $0x48] sm:$0xf0]  ;;  %v2823_v60 = vor.u32 %v3826_v51, %v2820_v52  ;;  %v3770_v30 = vld [vmem:[#allocation6 + $0x14] sm:$0xf]  ;;  %v2660_v38 = vld [vmem:[#allocation6 + $0x98] sm:$0xf0] }
  0x64   :  { %1029 = vmatpush.bf16.msrb.mxu1 %v2915_v61  ;;  %v2684_v61 = vld [vmem:[#allocation6 + $0xc8] sm:$0xf0]  ;;  %v3786_v35 = vld [vmem:[#allocation6 + $0x94] sm:$0xf]  ;;  %v2788_v44 = vld [vmem:[#allocation6 + $0x198] sm:$0xf0]  ;;  %v2599_v46 = vor.u32 %v3770_v30, %v2596_v34 }
  0x65   :  { %1042 = vmatpush.bf16.msrb.mxu2 %v2979_v62  ;;  %v3808_v62 = vld [vmem:[#allocation6 + $0x144] sm:$0xf]  ;;  %v2687_v3 = vor.u32 %v3792_v59, %v2684_v61  ;;  %v2663_v49 = vor.u32 %v3786_v35, %v2660_v38  ;;  %v2652_v51 = vld [vmem:[#allocation6 + $0x88] sm:$0xf0]  ;;  %v2900_v59 = vld [vmem:[#allocation6 + $0x278] sm:$0xf0] }
  0x66   :  { %1055 = vmatpush.bf16.msrb.mxu3 %v3043_v2  ;;  %v2623_v2 = vor.u32 %v3776_v56, %v2620_v57  ;;  %v2751_v4 = vor.u32 %v3808_v62, %v2748_v63  ;;  %v3768_v45 = vld [vmem:[#allocation6 + $0x4] sm:$0xf]  ;;  %v2780_v56 = vld [vmem:[#allocation6 + $0x188] sm:$0xf0]  ;;  %v3846_v57 = vld [vmem:[#allocation6 + $0x274] sm:$0xf] }
  0x67   :  { %1017 = vmatpush.bf16.msrb.mxu0 %v2843_v12  ;;  %v2676_v12 = vld [vmem:[#allocation6 + $0xb8] sm:$0xf0]  ;;  %v3784_v48 = vld [vmem:[#allocation6 + $0x84] sm:$0xf]  ;;  %v3878_v63 = vld [vmem:[#allocation6 + $0x374] sm:$0xf] }
  0x68   :  { %1030 = vmatpush.bf16.msrb.mxu1 %v2907_v16  ;;  %v2804_v16 = vld [vmem:[#allocation6 + $0x1b8] sm:$0xf0]  ;;  %v2679_v18 = vor.u32 %v3790_v10, %v2676_v12  ;;  %v3800_v52 = vld [vmem:[#allocation6 + $0x104] sm:$0xf]  ;;  %v2655_v1 = vor.u32 %v3784_v48, %v2652_v51  ;;  %v2892_v13 = vld [vmem:[#allocation6 + $0x268] sm:$0xf0] }
  0x69   :  { %1043 = vmatpush.bf16.msrb.mxu2 %v2971_v17  ;;  %v2615_v17 = vor.u32 %v3774_v5, %v2612_v9  ;;  %v2807_v23 = vor.u32 %v3822_v15, %v2804_v16  ;;  %v2964_v62 = vld [vmem:[#allocation6 + $0x2f8] sm:$0xf0]  ;;  %v2903_v9 = vor.u32 %v3846_v57, %v2900_v59  ;;  %v3844_v12 = vld [vmem:[#allocation6 + $0x264] sm:$0xf]  ;;  %v2956_v16 = vld [vmem:[#allocation6 + $0x2e8] sm:$0xf0] }
  0x6a   :  { %1056 = vmatpush.bf16.msrb.mxu3 %v3035_v21  ;;  %1018 = vmatmul.bf16.vlgmr.msrb.gmra.mxu0 %v4453_v36  ;;  %v2604_v21 = vld [vmem:[#allocation6 + $0x28] sm:$0xf0]  ;;  %v3028_v0 = vld [vmem:[#allocation6 + $0x378] sm:$0xf0]  ;;  %v3860_v14 = vld [vmem:[#allocation6 + $0x2e4] sm:$0xf] }
  0x6b   :  { %1062 = vmatpush.bf16.msra.mxu0 %v2647_v22  ;;  %1031 = vmatmul.bf16.vlgmr.msrb.gmra.mxu1 %v4457_v41  ;;  %v3788_v22 = vld [vmem:[#allocation6 + $0xa4] sm:$0xf]  ;;  %v2607_v29 = vor.u32 %v3772_v20, %v2604_v21  ;;  %v3084_v20 = vld [vmem:[#allocation6 + $0x3e8] sm:$0xf0]  ;;  %v2895_v21 = vor.u32 %v3844_v12, %v2892_v13  ;;  %v3012_v30 = vld [vmem:[#allocation6 + $0x358] sm:$0xf0] }
  0x6c   :  { %1075 = vmatpush.bf16.msra.mxu1 %v2711_v26  ;;  %1044 = vmatmul.bf16.vlgmr.msrb.gmra.mxu2 %v4451_v32  ;;  %v2732_v26 = vld [vmem:[#allocation6 + $0x128] sm:$0xf0]  ;;  %v3838_v48 = vld [vmem:[#allocation6 + $0x234] sm:$0xf]  ;;  %v2852_v13 = vld [vmem:[#allocation6 + $0x218] sm:$0xf0] }
  0x6d   :  { %1088 = vmatpush.bf16.msra.mxu2 %v2775_v27  ;;  %1057 = vmatmul.bf16.vlgmr.msrb.gmra.mxu3 %v4455_v37  ;;  %v3820_v27 = vld [vmem:[#allocation6 + $0x1a4] sm:$0xf]  ;;  %v2735_v33 = vor.u32 %v3804_v25, %v2732_v26  ;;  %v2884_v25 = vld [vmem:[#allocation6 + $0x258] sm:$0xf0]  ;;  %v3858_v26 = vld [vmem:[#allocation6 + $0x2d4] sm:$0xf] }
  0x6e   :  { %1101 = vmatpush.bf16.msra.mxu3 %v2839_v31  ;;  %v2671_v31 = vor.u32 %v3788_v22, %v2668_v24  ;;  %v2799_v39 = vor.u32 %v3820_v27, %v2796_v28  ;;  %v2959_v22 = vor.u32 %v3860_v14, %v2956_v16  ;;  %v3842_v24 = vld [vmem:[#allocation6 + $0x254] sm:$0xf]  ;;  %v2948_v28 = vld [vmem:[#allocation6 + $0x2d8] sm:$0xf0] }
  0x6f   :  { %1063 = vmatpush.bf16.msra.mxu0 %v2639_v40  ;;  %v3802_v40 = vld [vmem:[#allocation6 + $0x114] sm:$0xf]  ;;  %v2887_v34 = vor.u32 %v3842_v24, %v2884_v25  ;;  %v2951_v35 = vor.u32 %v3858_v26, %v2948_v28  ;;  %v2916_v16 = vld [vmem:[#allocation6 + $0x298] sm:$0xf0]  ;;  %v3832_v24 = vld [vmem:[#allocation6 + $0x204] sm:$0xf] }
  0x70   :  { %1076 = vmatpush.bf16.msra.mxu1 %v2703_v42  ;;  %v2724_v42 = vld [vmem:[#allocation6 + $0x118] sm:$0xf0]  ;;  %v3834_v12 = vld [vmem:[#allocation6 + $0x214] sm:$0xf]  ;;  %v2844_v25 = vld [vmem:[#allocation6 + $0x208] sm:$0xf0] }
  0x71   :  { %1089 = vmatpush.bf16.msra.mxu2 %v2767_v43  ;;  %v3818_v43 = vld [vmem:[#allocation6 + $0x194] sm:$0xf]  ;;  %v2727_v50 = vor.u32 %v3802_v40, %v2724_v42  ;;  %v2876_v40 = vld [vmem:[#allocation6 + $0x248] sm:$0xf0]  ;;  %v3848_v26 = vld [vmem:[#allocation6 + $0x284] sm:$0xf] }
  0x72   :  { %1102 = vmatpush.bf16.msra.mxu3 %v2831_v47  ;;  %v2588_v47 = vld [vmem:[#allocation6 + $0x8] sm:$0xf0]  ;;  %v3850_v14 = vld [vmem:[#allocation6 + $0x294] sm:$0xf] }
  0x73   :  { %1064 = vmatpush.bf16.msra.mxu0 %v2631_v53  ;;  %v2716_v53 = vld [vmem:[#allocation6 + $0x108] sm:$0xf0]  ;;  %v2591_v61 = vor.u32 %v3768_v45, %v2588_v47 }
  0x74   :  { %1077 = vmatpush.bf16.msra.mxu1 %v2695_v54  ;;  %v2791_v54 = vor.u32 %v3818_v43, %v2788_v44  ;;  %v2940_v43 = vld [vmem:[#allocation6 + $0x2c8] sm:$0xf0]  ;;  %v3872_v44 = vld [vmem:[#allocation6 + $0x344] sm:$0xf] }
  0x75   :  { %1090 = vmatpush.bf16.msra.mxu2 %v2759_v55  ;;  %v3816_v55 = vld [vmem:[#allocation6 + $0x184] sm:$0xf]  ;;  %v3004_v45 = vld [vmem:[#allocation6 + $0x348] sm:$0xf0] }
  0x76   :  { %1103 = vmatpush.bf16.msra.mxu3 %v2823_v60  ;;  %v3862_v60 = vld [vmem:[#allocation6 + $0x2f4] sm:$0xf]  ;;  %v2783_v5 = vor.u32 %v3816_v55, %v2780_v56  ;;  %v3060_v56 = vld [vmem:[#allocation6 + $0x3b8] sm:$0xf0]  ;;  %v2908_v28 = vld [vmem:[#allocation6 + $0x288] sm:$0xf0] }
  0x77   :  { %1065 = vmatpush.bf16.msra.mxu0 %v2623_v2  ;;  %v2719_v2 = vor.u32 %v3800_v52, %v2716_v53  ;;  %v2967_v10 = vor.u32 %v3862_v60, %v2964_v62  ;;  %v2932_v52 = vld [vmem:[#allocation6 + $0x2b8] sm:$0xf0]  ;;  %v3870_v53 = vld [vmem:[#allocation6 + $0x334] sm:$0xf]  ;;  %v2860_v62 = vld [vmem:[#allocation6 + $0x228] sm:$0xf0] }
  0x78   :  { %1078 = vmatpush.bf16.msra.mxu1 %v2687_v3  ;;  %v3894_v3 = vld [vmem:[#allocation6 + $0x3f4] sm:$0xf] }
  0x79   :  { %1091 = vmatpush.bf16.msra.mxu2 %v2751_v4  ;;  %v3092_v4 = vld [vmem:[#allocation6 + $0x3f8] sm:$0xf0]  ;;  %v3886_v55 = vld [vmem:[#allocation6 + $0x3b4] sm:$0xf] }
  0x7a   :  { %1104 = vmatpush.bf16.msra.mxu3 %v2815_v11  ;;  %v3031_v11 = vor.u32 %v3878_v63, %v3028_v0  ;;  %v3095_v15 = vor.u32 %v3894_v3, %v3092_v4  ;;  %v3852_v63 = vld [vmem:[#allocation6 + $0x2a4] sm:$0xf]  ;;  %v3063_v0 = vor.u32 %v3886_v55, %v3060_v56  ;;  %v2988_v3 = vld [vmem:[#allocation6 + $0x328] sm:$0xf0] }
  0x7b   :  { %1066 = vmatpush.bf16.msra.mxu0 %v2615_v17  ;;  %v3876_v17 = vld [vmem:[#allocation6 + $0x364] sm:$0xf] }
  0x7c   :  { %1079 = vmatpush.bf16.msra.mxu1 %v2679_v18  ;;  %v3020_v18 = vld [vmem:[#allocation6 + $0x368] sm:$0xf0]  ;;  %v3884_v4 = vld [vmem:[#allocation6 + $0x3a4] sm:$0xf] }
  0x7d   :  { %1092 = vmatpush.bf16.msra.mxu2 %v2743_v19  ;;  %v3892_v19 = vld [vmem:[#allocation6 + $0x3e4] sm:$0xf] }
  0x7e   :  { %1105 = vmatpush.bf16.msra.mxu3 %v2807_v23  ;;  %v3023_v23 = vor.u32 %v3876_v17, %v3020_v18  ;;  %v3087_v27 = vor.u32 %v3892_v19, %v3084_v20  ;;  %v3866_v17 = vld [vmem:[#allocation6 + $0x314] sm:$0xf]  ;;  %v2980_v18 = vld [vmem:[#allocation6 + $0x318] sm:$0xf0] }
  0x7f   :  { %1067 = vmatpush.bf16.msra.mxu0 %v2607_v29  ;;  %v3874_v29 = vld [vmem:[#allocation6 + $0x354] sm:$0xf]  ;;  %v3044_v20 = vld [vmem:[#allocation6 + $0x398] sm:$0xf0] }
  0x80   :  { %1080 = vmatpush.bf16.msra.mxu1 %v2671_v31  ;;  %v3890_v31 = vld [vmem:[#allocation6 + $0x3d4] sm:$0xf]  ;;  %v3015_v38 = vor.u32 %v3874_v29, %v3012_v30  ;;  %v3864_v29 = vld [vmem:[#allocation6 + $0x304] sm:$0xf]  ;;  %v2972_v30 = vld [vmem:[#allocation6 + $0x308] sm:$0xf0] }
  0x81   :  { %1093 = vmatpush.bf16.msra.mxu2 %v2735_v33  ;;  %v3076_v33 = vld [vmem:[#allocation6 + $0x3d8] sm:$0xf0]  ;;  %v3882_v19 = vld [vmem:[#allocation6 + $0x394] sm:$0xf] }
  0x82   :  { %1106 = vmatpush.bf16.msra.mxu3 %v2799_v39  ;;  %v3840_v39 = vld [vmem:[#allocation6 + $0x244] sm:$0xf]  ;;  %v3079_v42 = vor.u32 %v3890_v31, %v3076_v33  ;;  %v3036_v33 = vld [vmem:[#allocation6 + $0x388] sm:$0xf0] }
  0x83   :  { %1068 = vmatpush.bf16.msra.mxu0 %v2599_v46  ;;  %v3888_v46 = vld [vmem:[#allocation6 + $0x3c4] sm:$0xf] }
  0x84   :  { %1081 = vmatpush.bf16.msra.mxu1 %v2663_v49  ;;  %v2868_v49 = vld [vmem:[#allocation6 + $0x238] sm:$0xf0]  ;;  %v3880_v31 = vld [vmem:[#allocation6 + $0x384] sm:$0xf] }
  0x85   :  { %1094 = vmatpush.bf16.msra.mxu2 %v2727_v50  ;;  %v3854_v50 = vld [vmem:[#allocation6 + $0x2b4] sm:$0xf]  ;;  %v2871_v57 = vor.u32 %v3838_v48, %v2868_v49 }
  0x86   :  { %1107 = vmatpush.bf16.msra.mxu3 %v2791_v54  ;;  %v2996_v54 = vld [vmem:[#allocation6 + $0x338] sm:$0xf0]  ;;  %v2935_v59 = vor.u32 %v3854_v50, %v2932_v52 }
  0x87   :  { %1069 = vmatpush.bf16.msra.mxu0 %v2591_v61  ;;  %v2999_v60 = vor.u32 %v3870_v53, %v2996_v54  ;;  %v3836_v61 = vld [vmem:[#allocation6 + $0x224] sm:$0xf] }
  0x88   :  { %1082 = vmatpush.bf16.msra.mxu1 %v2655_v1  ;;  %v2924_v1 = vld [vmem:[#allocation6 + $0x2a8] sm:$0xf0] }
  0x89   :  { %1095 = vmatpush.bf16.msra.mxu2 %v2719_v2  ;;  %v3868_v2 = vld [vmem:[#allocation6 + $0x324] sm:$0xf] }
  0x8a   :  { %1108 = vmatpush.bf16.msra.mxu3 %v2783_v5  ;;  %1070 = vmatmul.bf16.vlgmr.msra.gmra.mxu0 %v4442_v6  ;;  %v3068_v6 = vld [vmem:[#allocation6 + $0x3c8] sm:$0xf0] }
  0x8b   :  { %1114 = vmatpush.bf16.msrb.mxu0 %v2903_v9  ;;  %1083 = vmatmul.bf16.vlgmr.msra.gmra.mxu1 %v4446_v8  ;;  %v3007_v8 = vor.u32 %v3872_v44, %v3004_v45  ;;  %v3071_v51 = vor.u32 %v3888_v46, %v3068_v6  ;;  %v3052_v5 = vld [vmem:[#allocation6 + $0x3a8] sm:$0xf0]  ;;  %v2863_v9 = vor.u32 %v3836_v61, %v2860_v62  ;;  %v3899_v44 = vld [vmem:[#allocation9 + $0x18] sm:$0xff]  ;;  %v3898_v45 = vld [vmem:[#allocation9 + $0x10] sm:$0xff] }
  0x8c   :  { %1127 = vmatpush.bf16.msrb.mxu1 %v2967_v10  ;;  %1096 = vmatmul.bf16.vlgmr.msra.gmra.mxu2 %v4439_v58  ;;  %v3856_v58 = vld [vmem:[#allocation6 + $0x2c4] sm:$0xf]  ;;  %v2927_v10 = vor.u32 %v3852_v63, %v2924_v1  ;;  %v3911_v63 = vld [vmem:[#allocation9 + $0x78] sm:$0xff] }
  0x8d   :  { %1140 = vmatpush.bf16.msrb.mxu2 %v3031_v11  ;;  %1109 = vmatmul.bf16.vlgmr.msra.gmra.mxu3 %v4444_v7  ;;  %v2879_v7 = vor.u32 %v3840_v39, %v2876_v40  ;;  %v2943_v47 = vor.u32 %v3856_v58, %v2940_v43  ;;  %v2991_v11 = vor.u32 %v3868_v2, %v2988_v3  ;;  %v3903_v40 = vld [vmem:[#allocation9 + $0x38] sm:$0xff]  ;;  %v3902_v58 = vld [vmem:[#allocation9 + $0x30] sm:$0xff]  ;;  %v3900_v43 = vld [vmem:[#allocation9 + $0x20] sm:$0xff] }
  0x8e   :  { %1153 = vmatpush.bf16.msrb.mxu3 %v3095_v15  ;;  %v3055_v15 = vor.u32 %v3884_v4, %v3052_v5  ;;  %v3039_v39 = vor.u32 %v3880_v31, %v3036_v33  ;;  %v3910_v2 = vld [vmem:[#allocation9 + $0x70] sm:$0xff] }
  0x8f   :  { %1115 = vmatpush.bf16.msrb.mxu0 %v2895_v21  ;;  %v2855_v21 = vor.u32 %v3834_v12, %v2852_v13  ;;  %v3908_v12 = vld [vmem:[#allocation9 + $0x60] sm:$0xff]  ;;  %v3907_v13 = vld [vmem:[#allocation9 + $0x58] sm:$0xff] }
  0x90   :  { %1128 = vmatpush.bf16.msrb.mxu1 %v2959_v22  ;;  %v2919_v22 = vor.u32 %v3850_v14, %v2916_v16  ;;  %v3906_v14 = vld [vmem:[#allocation9 + $0x50] sm:$0xff] }
  0x91   :  { %1141 = vmatpush.bf16.msrb.mxu2 %v3023_v23  ;;  %v2983_v23 = vor.u32 %v3866_v17, %v2980_v18  ;;  %v3905_v17 = vld [vmem:[#allocation9 + $0x48] sm:$0xff] }
  0x92   :  { %1154 = vmatpush.bf16.msrb.mxu3 %v3087_v27  ;;  %v3047_v27 = vor.u32 %v3882_v19, %v3044_v20 }
  0x93   :  { %1116 = vmatpush.bf16.msrb.mxu0 %v2887_v34  ;;  %v2847_v34 = vor.u32 %v3832_v24, %v2844_v25 }
  0x94   :  { %1129 = vmatpush.bf16.msrb.mxu1 %v2951_v35  ;;  %v2911_v35 = vor.u32 %v3848_v26, %v2908_v28 }
  0x95   :  { %1142 = vmatpush.bf16.msrb.mxu2 %v3015_v38  ;;  %v2975_v38 = vor.u32 %v3864_v29, %v2972_v30 }
  0x96   :  { %1155 = vmatpush.bf16.msrb.mxu3 %v3079_v42  ;;  %v3901_v42 = vld [vmem:[#allocation9 + $0x28] sm:$0xff] }
  0x97   :  { %1117 = vmatpush.bf16.msrb.mxu0 %v2879_v7 }
  0x98   :  { %1130 = vmatpush.bf16.msrb.mxu1 %v2943_v47  ;;  %v312_v47 = vld [vmem:[#allocation8] sm:$0x3] }
  0x99   :  { %1143 = vmatpush.bf16.msrb.mxu2 %v3007_v8  ;;  %v314_v8 = vperm.slane %v312_v47, 0 }
  0x9a   :  { %1156 = vmatpush.bf16.msrb.mxu3 %v3071_v51 }
  0x9b   :  { %1118 = vmatpush.bf16.msrb.mxu0 %v2871_v57 }
  0x9c   :  { %1131 = vmatpush.bf16.msrb.mxu1 %v2935_v59 }
  0x9d   :  { %1144 = vmatpush.bf16.msrb.mxu2 %v2999_v60 }
  0x9e   :  { %1157 = vmatpush.bf16.msrb.mxu3 %v3063_v0 }
  0x9f   :  { %1119 = vmatpush.bf16.msrb.mxu0 %v2863_v9  ;;  %v3909_v9 = vld [vmem:[#allocation9 + $0x68] sm:$0xff] }
  0xa0   :  { %1132 = vmatpush.bf16.msrb.mxu1 %v2927_v10 }
  0xa1   :  { %1145 = vmatpush.bf16.msrb.mxu2 %v2991_v11 }
  0xa2   :  { %1158 = vmatpush.bf16.msrb.mxu3 %v3055_v15 }
  0xa3   :  { %1120 = vmatpush.bf16.msrb.mxu0 %v2855_v21  ;;  %v3904_v21 = vld [vmem:[#allocation9 + $0x40] sm:$0xff] }
  0xa4   :  { %1133 = vmatpush.bf16.msrb.mxu1 %v2919_v22 }
  0xa5   :  { %1146 = vmatpush.bf16.msrb.mxu2 %v2983_v23  ;;  %v315_v23 = vperm.slane %v312_v47, 1 }
  0xa6   :  { %1159 = vmatpush.bf16.msrb.mxu3 %v3047_v27 }
  0xa7   :  { %1121 = vmatpush.bf16.msrb.mxu0 %v2847_v34 }
  0xa8   :  { %1134 = vmatpush.bf16.msrb.mxu1 %v2911_v35 }
  0xa9   :  { %1147 = vmatpush.bf16.msrb.mxu2 %v2975_v38 }
  0xaa   :  { %1160 = vmatpush.bf16.msrb.mxu3 %v3039_v39  ;;  %1122 = vmatmul.bf16.vlgmr.msrb.gmra.mxu0 %v4453_v36  ;;  %v3897_v36 = vld [vmem:[#allocation9 + $0x8] sm:$0xff] }
  0xab   :  { %1302 = vmatpush.bf16.msra.mxu0 %v3903_v40  ;;  %1135 = vmatmul.bf16.vlgmr.msrb.gmra.mxu1 %v4457_v41 }
  0xac   :  { %1148 = vmatmul.bf16.vlgmr.msrb.gmra.mxu2 %v4451_v32  ;;  %v3896_v32 = vld [vmem:[#allocation9] sm:$0xff]  ;;  %1315 = vmatpush.bf16.msra.mxu1 %v3911_v63  ;;  %v3929_v63 = vld [vmem:[#allocation11 + $0x44] sm:$0xf0] }
  0xad   :  { %1161 = vmatmul.bf16.vlgmr.msrb.gmra.mxu3 %v4455_v37 }
  0xaf   :  { %1303 = vmatpush.bf16.msra.mxu0 %v3902_v58 }
  0xb0   :  { %1316 = vmatpush.bf16.msra.mxu1 %v3910_v2  ;;  %v3916_v2 = vld [vmem:[#allocation15 + $0x20] sm:$0xff] }
  0xb3   :  { %1304 = vmatpush.bf16.msra.mxu0 %v3901_v42 }
  0xb4   :  { %1317 = vmatpush.bf16.msra.mxu1 %v3909_v9  ;;  %v3927_v9 = vld [vmem:[#allocation11 + $0x34] sm:$0xf0] }
  0xb7   :  { %1305 = vmatpush.bf16.msra.mxu0 %v3900_v43 }
  0xb8   :  { %1318 = vmatpush.bf16.msra.mxu1 %v3908_v12  ;;  %v3915_v12 = vld [vmem:[#allocation15 + $0x18] sm:$0xff] }
  0xbb   :  { %1306 = vmatpush.bf16.msra.mxu0 %v3899_v44 }
  0xbc   :  { %1319 = vmatpush.bf16.msra.mxu1 %v3907_v13 }
  0xbf   :  { %1307 = vmatpush.bf16.msra.mxu0 %v3898_v45 }
  0xc0   :  { %1320 = vmatpush.bf16.msra.mxu1 %v3906_v14 }
  0xc3   :  { %1308 = vmatpush.bf16.msra.mxu0 %v3897_v36  ;;  %v3935_v36 = vld [vmem:[#allocation11 + $0x74] sm:$0xf0] }
  0xc4   :  { %1321 = vmatpush.bf16.msra.mxu1 %v3905_v17  ;;  %v3924_v17 = vld [vmem:[#allocation11 + $0x24] sm:$0xf] }
  0xc7   :  { %v967_v46 = vpop.f32.mrf.mxu0  ;;  %1309 = vmatpush.bf16.msra.mxu0 %v3896_v32  ;;  %v3252_v32 = vld [vmem:[#allocation11 + $0x78] sm:$0xf0] }
  0xc8   :  { %v980_v6 = vpop.f32.mrf.mxu1  ;;  %v968_v50 = vadd.f32 %v967_v46, %v314_v8  ;;  %1322 = vmatpush.bf16.msra.mxu1 %v3904_v21  ;;  %v3918_v8 = vld [vmem:[#allocation15 + $0x30] sm:$0xff] }
  0xca   :  { %v981_v52 = vadd.f32 %v980_v6, %v968_v50  ;;  %v3919_v6 = vld [vmem:[#allocation15 + $0x38] sm:$0xff]  ;;  %v3932_v50 = vld [vmem:[#allocation11 + $0x64] sm:$0xf] }
  0xcb   :  { %1398 = vmatpush.bf16.msra.mxu2 %v3919_v6  ;;  %v4052_v6 = vld [vmem:[#allocation14 + $0x39c] sm:$0xf0] }
  0xcf   :  { %v993_v7 = vpop.f32.mrf.mxu2  ;;  %v969_v37 = vpop.f32.mrf.mxu0  ;;  %1399 = vmatpush.bf16.msra.mxu2 %v3918_v8  ;;  %v3996_v8 = vld [vmem:[#allocation14 + $0x1dc] sm:$0xf0] }
  0xd0   :  { %v1006_v41 = vpop.f32.mrf.mxu3  ;;  %v982_v48 = vpop.f32.mrf.mxu1  ;;  %v994_v53 = vadd.f32 %v993_v7, %v981_v52  ;;  %v3250_v7 = vld [vmem:[#allocation11 + $0x70] sm:$0xf]  ;;  %v3244_v52 = vld [vmem:[#allocation11 + $0x68] sm:$0xf0] }
  0xd1   :  { %v3251_v47 = vor.u32 %v3935_v36, %v3250_v7  ;;  %v3242_v48 = vld [vmem:[#allocation11 + $0x60] sm:$0xf]  ;;  %v4048_v36 = vld [vmem:[#allocation14 + $0x384] sm:$0xf] }
  0xd2   :  { %v1007_v54 = vadd.f32 %v1006_v41, %v994_v53  ;;  %v3934_v41 = vld [vmem:[#allocation11 + $0x74] sm:$0xf]  ;;  %v3247_v53 = vor.u32 %v3932_v50, %v3244_v52  ;;  %v3674_v52 = vld [vmem:[#allocation14 + $0x340] sm:$0xf] }
  0xd3   :  { %v3255_v37 = vor.u32 %v3934_v41, %v3252_v32  ;;  %1527 = vmatpush.bf16.msra.mxu3 %v3251_v47  ;;  %v3708_v47 = vld [vmem:[#allocation14 + $0x3a0] sm:$0xf0]  ;;  %v3482_v41 = vld [vmem:[#allocation14 + $0x1c0] sm:$0xf] }
  0xd4   :  { %v3483_v50 = vor.u32 %v3996_v8, %v3482_v41  ;;  %v4008_v41 = vld [vmem:[#allocation14 + $0x244] sm:$0xf] }
  0xd5   :  { %1540 = vmatpush.bf16.msrb.mxu0 %v3255_v37  ;;  %v3992_v37 = vld [vmem:[#allocation14 + $0x1c4] sm:$0xf] }
  0xd6   :  { %2343 = vmatpush.bf16.msrb.mxu1 %v3483_v50 }
  0xd7   :  { %v995_v49 = vpop.f32.mrf.mxu2 }
  0xd8   :  { %v1008_v51 = vpop.f32.mrf.mxu3  ;;  %v3933_v49 = vld [vmem:[#allocation11 + $0x64] sm:$0xf0] }
  0xd9   :  { %v3243_v51 = vor.u32 %v3933_v49, %v3242_v48  ;;  %1541 = vmatpush.bf16.msrb.mxu0 %v3247_v53  ;;  %v3484_v48 = vld [vmem:[#allocation14 + $0x1e0] sm:$0xf0]  ;;  %v3711_v49 = vor.u32 %v4048_v36, %v3708_v47  ;;  %v4044_v53 = vld [vmem:[#allocation14 + $0x35c] sm:$0xf0] }
  0xda   :  { %v3546_v36 = vld [vmem:[#allocation14 + $0x240] sm:$0xf] }
  0xdb   :  { %1528 = vmatpush.bf16.msra.mxu3 %v3243_v51  ;;  %v3487_v51 = vor.u32 %v3992_v37, %v3484_v48  ;;  %v4012_v47 = vld [vmem:[#allocation14 + $0x25c] sm:$0xf0] }
  0xdc   :  { %v3290_v48 = vld [vmem:[#allocation14 + $0x40] sm:$0xf]  ;;  %v3547_v50 = vor.u32 %v4012_v47, %v3546_v36  ;;  %v3428_v36 = vld [vmem:[#allocation14 + $0x168] sm:$0xf0] }
  0xe7   :  { %v1019_v55 = vpop.f32.mrf.mxu0 }
  0xe8   :  { %v1020_v56 = vadd.f32 %v1019_v55, %v1007_v54  ;;  %v1032_v57 = vpop.f32.mrf.mxu1  ;;  %v3234_v54 = vld [vmem:[#allocation11 + $0x50] sm:$0xf]  ;;  %v3931_v55 = vld [vmem:[#allocation11 + $0x54] sm:$0xf0] }
  0xea   :  { %v1033_v59 = vadd.f32 %v1032_v57, %v1020_v56  ;;  %v3930_v56 = vld [vmem:[#allocation11 + $0x54] sm:$0xf]  ;;  %v3236_v57 = vld [vmem:[#allocation11 + $0x58] sm:$0xf0] }
  0xef   :  { %v1045_v60 = vpop.f32.mrf.mxu2  ;;  %v1021_v1 = vpop.f32.mrf.mxu0 }
  0xf0   :  { %v1046_v61 = vadd.f32 %v1045_v60, %v1033_v59  ;;  %v1058_v62 = vpop.f32.mrf.mxu3  ;;  %v1034_v3 = vpop.f32.mrf.mxu1  ;;  %v3917_v59 = vld [vmem:[#allocation15 + $0x28] sm:$0xff]  ;;  %v3235_v60 = vor.u32 %v3931_v55, %v3234_v54  ;;  %v4040_v54 = vld [vmem:[#allocation14 + $0x344] sm:$0xf] }
  0xf1   :  { %v3228_v1 = vld [vmem:[#allocation11 + $0x48] sm:$0xf0]  ;;  %1400 = vmatpush.bf16.msra.mxu2 %v3917_v59  ;;  %v3676_v55 = vld [vmem:[#allocation14 + $0x360] sm:$0xf0] }
  0xf2   :  { %v1059_v0 = vadd.f32 %v1058_v62, %v1046_v61  ;;  %v3239_v61 = vor.u32 %v3930_v56, %v3236_v57  ;;  %v3226_v62 = vld [vmem:[#allocation11 + $0x40] sm:$0xf]  ;;  %1529 = vmatpush.bf16.msra.mxu3 %v3235_v60  ;;  %v3984_v60 = vld [vmem:[#allocation14 + $0x184] sm:$0xf] }
  0xf3   :  { %v3227_v3 = vor.u32 %v3929_v63, %v3226_v62  ;;  %v3450_v56 = vld [vmem:[#allocation14 + $0x180] sm:$0xf]  ;;  %v3675_v62 = vor.u32 %v4044_v53, %v3674_v52  ;;  %v3944_v52 = vld [vmem:[#allocation14 + $0x44] sm:$0xf] }
  0xf4   :  { %v1166_v4 = vmax.f32 %v1059_v0, 0.0  ;;  %v3928_v0 = vld [vmem:[#allocation11 + $0x44] sm:$0xf]  ;;  %1542 = vmatpush.bf16.msrb.mxu0 %v3239_v61 }
  0xf5   :  { %1401 = vmatpush.bf16.msra.mxu2 %v3916_v2  ;;  %v3988_v57 = vld [vmem:[#allocation14 + $0x19c] sm:$0xf0]  ;;  %v3452_v61 = vld [vmem:[#allocation14 + $0x1a0] sm:$0xf0]  ;;  %v3679_v2 = vor.u32 %v4040_v54, %v3676_v55 }
  0xf6   :  { %v1168_v5 = vpack.c.bf16 %v1166_v4, %v1166_v4  ;;  %v3231_v4 = vor.u32 %v3928_v0, %v3228_v1  ;;  %1530 = vmatpush.bf16.msra.mxu3 %v3227_v3  ;;  %v3451_v59 = vor.u32 %v3988_v57, %v3450_v56  ;;  %v3455_v63 = vor.u32 %v3984_v60, %v3452_v61  ;;  %v3642_v0 = vld [vmem:[#allocation14 + $0x300] sm:$0xf]  ;;  %v3292_v53 = vld [vmem:[#allocation14 + $0x60] sm:$0xf0] }
  0xf7   :  { %v1047_v10 = vpop.f32.mrf.mxu2  ;;  %v4036_v1 = vld [vmem:[#allocation14 + $0x31c] sm:$0xf0]  ;;  %v3516_v61 = vld [vmem:[#allocation14 + $0x220] sm:$0xf0] }
  0xf8   :  { %1310 = vmatmul.bf16.vlgmr.msra.gmra.mxu0 %v1168_v5  ;;  %v1060_v11 = vpop.f32.mrf.mxu3  ;;  %v3218_v5 = vld [vmem:[#allocation11 + $0x30] sm:$0xf]  ;;  %v3926_v10 = vld [vmem:[#allocation11 + $0x34] sm:$0xf]  ;;  %v3418_v3 = vld [vmem:[#allocation14 + $0x140] sm:$0xf]  ;;  %2344 = vmatpush.bf16.msrb.mxu1 %v3451_v59 }
  0xf9   :  { %v3220_v11 = vld [vmem:[#allocation11 + $0x38] sm:$0xf0]  ;;  %v3219_v13 = vor.u32 %v3927_v9, %v3218_v5  ;;  %1543 = vmatpush.bf16.msrb.mxu0 %v3231_v4  ;;  %1402 = vmatpush.bf16.msra.mxu2 %v3915_v12  ;;  %v3980_v4 = vld [vmem:[#allocation14 + $0x15c] sm:$0xf0]  ;;  %v3976_v5 = vld [vmem:[#allocation14 + $0x144] sm:$0xf] }
  0xfa   :  { %v3223_v14 = vor.u32 %v3926_v10, %v3220_v11  ;;  %v4032_v9 = vld [vmem:[#allocation14 + $0x304] sm:$0xf]  ;;  %v3419_v12 = vor.u32 %v3980_v4, %v3418_v3  ;;  %v3514_v56 = vld [vmem:[#allocation14 + $0x200] sm:$0xf] }
  0xfb   :  { %1531 = vmatpush.bf16.msra.mxu3 %v3219_v13  ;;  %v3644_v10 = vld [vmem:[#allocation14 + $0x320] sm:$0xf0]  ;;  %v4004_v57 = vld [vmem:[#allocation14 + $0x21c] sm:$0xf0] }
  0xfc   :  { %v3420_v11 = vld [vmem:[#allocation14 + $0x160] sm:$0xf0]  ;;  %2345 = vmatpush.bf16.msrb.mxu1 %v3419_v12  ;;  %v3258_v3 = vld [vmem:[#allocation14] sm:$0xf]  ;;  %v3490_v12 = vld [vmem:[#allocation14 + $0x1c8] sm:$0xf] }
  0xfd   :  { %1544 = vmatpush.bf16.msrb.mxu0 %v3223_v14  ;;  %v3423_v13 = vor.u32 %v3976_v5, %v3420_v11  ;;  %v3386_v14 = vld [vmem:[#allocation14 + $0x100] sm:$0xf]  ;;  %v4000_v59 = vld [vmem:[#allocation14 + $0x204] sm:$0xf] }
  0xfe   :  { %v3940_v5 = vld [vmem:[#allocation14 + $0x1c] sm:$0xf0]  ;;  %v3260_v11 = vld [vmem:[#allocation14 + $0x20] sm:$0xf0] }
 0x107   :  { %v1071_v15 = vpop.f32.mrf.mxu0 }
 0x108   :  { %v1084_v16 = vpop.f32.mrf.mxu1  ;;  %v1072_v26 = vadd.f32 %v1071_v15, %v315_v23  ;;  %v3210_v15 = vld [vmem:[#allocation11 + $0x20] sm:$0xf] }
 0x10a   :  { %v1085_v27 = vadd.f32 %v1084_v16, %v1072_v26  ;;  %v3925_v16 = vld [vmem:[#allocation11 + $0x24] sm:$0xf0]  ;;  %v3922_v26 = vld [vmem:[#allocation11 + $0x14] sm:$0xf] }
 0x10f   :  { %v1097_v18 = vpop.f32.mrf.mxu2  ;;  %v1073_v20 = vpop.f32.mrf.mxu0 }
 0x110   :  { %v1110_v19 = vpop.f32.mrf.mxu3  ;;  %v1086_v22 = vpop.f32.mrf.mxu1  ;;  %v1098_v28 = vadd.f32 %v1097_v18, %v1085_v27  ;;  %v3212_v18 = vld [vmem:[#allocation11 + $0x28] sm:$0xf0]  ;;  %v3211_v20 = vor.u32 %v3925_v16, %v3210_v15  ;;  %v3643_v15 = vor.u32 %v4036_v1, %v3642_v0  ;;  %v3972_v16 = vld [vmem:[#allocation14 + $0x11c] sm:$0xf0] }
 0x111   :  { %v3215_v21 = vor.u32 %v3924_v17, %v3212_v18  ;;  %v3913_v27 = vld [vmem:[#allocation15 + $0x8] sm:$0xff]  ;;  %v3968_v17 = vld [vmem:[#allocation14 + $0x104] sm:$0xf] }
 0x112   :  { %v1111_v29 = vadd.f32 %v1110_v19, %v1098_v28  ;;  %v3914_v19 = vld [vmem:[#allocation15 + $0x10] sm:$0xff]  ;;  %1532 = vmatpush.bf16.msra.mxu3 %v3211_v20  ;;  %v3388_v18 = vld [vmem:[#allocation14 + $0x120] sm:$0xf0]  ;;  %v3610_v20 = vld [vmem:[#allocation14 + $0x2c0] sm:$0xf] }
 0x113   :  { %1403 = vmatpush.bf16.msra.mxu2 %v3914_v19  ;;  %1545 = vmatpush.bf16.msrb.mxu0 %v3215_v21  ;;  %v3647_v19 = vor.u32 %v4032_v9, %v3644_v10  ;;  %v4028_v21 = vld [vmem:[#allocation14 + $0x2dc] sm:$0xf0]  ;;  %v4057_v0 = vld [vmem:[#allocation14 + $0x3cc] sm:$0xf]  ;;  %v3936_v9 = vld [vmem:[#allocation14 + $0x4] sm:$0xf]  ;;  %v3515_v10 = vor.u32 %v4004_v57, %v3514_v56 }
 0x114   :  { %v3748_v1 = vld [vmem:[#allocation14 + $0x3e8] sm:$0xf0]  ;;  %v3618_v56 = vld [vmem:[#allocation14 + $0x2c8] sm:$0xf] }
 0x115   :  { %v4029_v57 = vld [vmem:[#allocation14 + $0x2e4] sm:$0xf0] }
 0x117   :  { %v1099_v24 = vpop.f32.mrf.mxu2  ;;  %1404 = vmatpush.bf16.msra.mxu2 %v3913_v27  ;;  %v3354_v27 = vld [vmem:[#allocation14 + $0xc0] sm:$0xf] }
 0x118   :  { %v1112_v25 = vpop.f32.mrf.mxu3  ;;  %v3202_v24 = vld [vmem:[#allocation11 + $0x10] sm:$0xf] }
 0x119   :  { %v3923_v25 = vld [vmem:[#allocation11 + $0x14] sm:$0xf0] }
 0x11a   :  { %v3203_v28 = vor.u32 %v3923_v25, %v3202_v24  ;;  %v3612_v24 = vld [vmem:[#allocation14 + $0x2e0] sm:$0xf0]  ;;  %v3387_v25 = vor.u32 %v3972_v16, %v3386_v14 }
 0x11c   :  { %1533 = vmatpush.bf16.msra.mxu3 %v3203_v28  ;;  %v3611_v28 = vor.u32 %v4028_v21, %v3610_v20  ;;  %2346 = vmatpush.bf16.msrb.mxu1 %v3387_v25  ;;  %v3714_v20 = vld [vmem:[#allocation14 + $0x388] sm:$0xf]  ;;  %v3716_v25 = vld [vmem:[#allocation14 + $0x3a8] sm:$0xf0] }
 0x11d   :  { %v4053_v21 = vld [vmem:[#allocation14 + $0x3a4] sm:$0xf0] }
 0x127   :  { %v1123_v30 = vpop.f32.mrf.mxu0 }
 0x128   :  { %v1136_v31 = vpop.f32.mrf.mxu1  ;;  %v1124_v33 = vadd.f32 %v1123_v30, %v1111_v29  ;;  %v3204_v29 = vld [vmem:[#allocation11 + $0x18] sm:$0xf0] }
 0x129   :  { %v3207_v30 = vor.u32 %v3922_v26, %v3204_v29  ;;  %v3391_v26 = vor.u32 %v3968_v17, %v3388_v18  ;;  %v3964_v29 = vld [vmem:[#allocation14 + $0xdc] sm:$0xf0]  ;;  %v3993_v17 = vld [vmem:[#allocation14 + $0x1cc] sm:$0xf] }
 0x12a   :  { %v1137_v34 = vadd.f32 %v1136_v31, %v1124_v33  ;;  %v3194_v31 = vld [vmem:[#allocation11] sm:$0xf]  ;;  %v3921_v33 = vld [vmem:[#allocation11 + $0x4] sm:$0xf0]  ;;  %v3492_v18 = vld [vmem:[#allocation14 + $0x1e8] sm:$0xf0] }
 0x12b   :  { %1546 = vmatpush.bf16.msrb.mxu0 %v3207_v30  ;;  %v3960_v30 = vld [vmem:[#allocation14 + $0xc4] sm:$0xf] }
 0x12f   :  { %v1149_v35 = vpop.f32.mrf.mxu2  ;;  %v1125_v40 = vpop.f32.mrf.mxu0 }
 0x130   :  { %v1150_v38 = vadd.f32 %v1149_v35, %v1137_v34  ;;  %v1162_v39 = vpop.f32.mrf.mxu3  ;;  %v1138_v58 = vpop.f32.mrf.mxu1  ;;  %v3920_v34 = vld [vmem:[#allocation11 + $0x4] sm:$0xf] }
 0x131   :  { %v3912_v35 = vld [vmem:[#allocation15] sm:$0xff] }
 0x132   :  { %v1163_v42 = vadd.f32 %v1162_v39, %v1150_v38  ;;  %v3195_v38 = vor.u32 %v3921_v33, %v3194_v31  ;;  %v3196_v39 = vld [vmem:[#allocation11 + $0x8] sm:$0xf0]  ;;  %1405 = vmatpush.bf16.msra.mxu2 %v3912_v35  ;;  %v3738_v58 = vld [vmem:[#allocation14 + $0x3c0] sm:$0xf]  ;;  %v3356_v31 = vld [vmem:[#allocation14 + $0xe0] sm:$0xf0] }
 0x133   :  { %v3199_v40 = vor.u32 %v3920_v34, %v3196_v39  ;;  %v3578_v34 = vld [vmem:[#allocation14 + $0x280] sm:$0xf]  ;;  %v3580_v39 = vld [vmem:[#allocation14 + $0x2a0] sm:$0xf0] }
 0x134   :  { %v1167_v43 = vmax.f32 %v1163_v42, 0.0  ;;  %1534 = vmatpush.bf16.msra.mxu3 %v3195_v38  ;;  %v4060_v42 = vld [vmem:[#allocation14 + $0x3dc] sm:$0xf0]  ;;  %v4016_v38 = vld [vmem:[#allocation14 + $0x284] sm:$0xf] }
 0x135   :  { %1547 = vmatpush.bf16.msrb.mxu0 %v3199_v40  ;;  %v4020_v35 = vld [vmem:[#allocation14 + $0x29c] sm:$0xf0]  ;;  %v4079_v40 = vld [vmem:[%s4516_s4] ss:$0 sm:$0xff] }
 0x136   :  { %v1169_v44 = vpack.c.bf16 %v1167_v43, %v1167_v43  ;;  %v4056_v43 = vld [vmem:[#allocation14 + $0x3c4] sm:$0xf] }
 0x137   :  { %v1151_v45 = vpop.f32.mrf.mxu2 }
 0x138   :  { %v1164_v46 = vpop.f32.mrf.mxu3  ;;  %1323 = vmatmul.bf16.vlgmr.msra.gmra.mxu1 %v1169_v44  ;;  %v3739_v44 = vor.u32 %v4060_v42, %v3738_v58  ;;  %v3740_v45 = vld [vmem:[#allocation14 + $0x3e0] sm:$0xf0]  ;;  %2369 = vmatpush.bf16.msrb.mxu3 %v3487_v51  ;;  %v3355_v58 = vor.u32 %v3964_v29, %v3354_v27  ;;  %v3359_v42 = vor.u32 %v3960_v30, %v3356_v31  ;;  %v3948_v51 = vld [vmem:[#allocation14 + $0x5c] sm:$0xf0]  ;;  %v3458_v30 = vld [vmem:[#allocation14 + $0x188] sm:$0xf] }
 0x139   :  { %v3706_v46 = vld [vmem:[#allocation14 + $0x380] sm:$0xf]  ;;  %v3743_v7 = vor.u32 %v4056_v43, %v3740_v45  ;;  %v3495_v29 = vor.u32 %v3993_v17, %v3492_v18  ;;  %v3989_v31 = vld [vmem:[#allocation14 + $0x1a4] sm:$0xf0]  ;;  %v4009_v17 = vld [vmem:[#allocation14 + $0x24c] sm:$0xf] }
 0x13a   :  { %2356 = vmatpush.bf16.msrb.mxu2 %v3739_v44  ;;  %v3707_v32 = vor.u32 %v4052_v6, %v3706_v46  ;;  %v3322_v43 = vld [vmem:[#allocation14 + $0x80] sm:$0xf]  ;;  %v3579_v44 = vor.u32 %v4020_v35, %v3578_v34  ;;  %v3952_v46 = vld [vmem:[#allocation14 + $0x84] sm:$0xf]  ;;  %2347 = vmatpush.bf16.msrb.mxu1 %v3355_v58  ;;  %v3985_v34 = vld [vmem:[#allocation14 + $0x18c] sm:$0xf] }
 0x13b   :  { %2382 = vmatpush.bf16.msra.mxu0 %v3743_v7  ;;  %v3956_v45 = vld [vmem:[#allocation14 + $0x9c] sm:$0xf0]  ;;  %v3324_v6 = vld [vmem:[#allocation14 + $0xa0] sm:$0xf0]  ;;  %v3583_v7 = vor.u32 %v4016_v38, %v3580_v39  ;;  %v3460_v35 = vld [vmem:[#allocation14 + $0x1a8] sm:$0xf0] }
 0x13c   :  { %2370 = vmatpush.bf16.msrb.mxu3 %v3455_v63  ;;  %v3323_v8 = vor.u32 %v3956_v45, %v3322_v43  ;;  %v3327_v37 = vor.u32 %v3952_v46, %v3324_v6  ;;  %v4061_v63 = vld [vmem:[#allocation14 + $0x3e4] sm:$0xf0]  ;;  %v4041_v58 = vld [vmem:[#allocation14 + $0x34c] sm:$0xf]  ;;  %v3459_v43 = vor.u32 %v3989_v31, %v3458_v30 }
 0x13d   :  { %v3682_v39 = vld [vmem:[#allocation14 + $0x348] sm:$0xf]  ;;  %v4001_v30 = vld [vmem:[#allocation14 + $0x20c] sm:$0xf] }
 0x13e   :  { %2357 = vmatpush.bf16.msrb.mxu2 %v3707_v32  ;;  %v3548_v32 = vld [vmem:[#allocation14 + $0x260] sm:$0xf0]  ;;  %2348 = vmatpush.bf16.msrb.mxu1 %v3323_v8  ;;  %v3426_v45 = vld [vmem:[#allocation14 + $0x148] sm:$0xf]  ;;  %v4033_v8 = vld [vmem:[#allocation14 + $0x30c] sm:$0xf] }
 0x13f   :  { %2383 = vmatpush.bf16.msra.mxu0 %v3711_v49  ;;  %v3551_v55 = vor.u32 %v4008_v41, %v3548_v32  ;;  %v3981_v46 = vld [vmem:[#allocation14 + $0x164] sm:$0xf0] }
 0x140   :  { %2371 = vmatpush.bf16.msrb.mxu3 %v3423_v13  ;;  %v3997_v13 = vld [vmem:[#allocation14 + $0x1e4] sm:$0xf0] }
 0x141   :  { %v3491_v27 = vor.u32 %v3997_v13, %v3490_v12  ;;  %v3650_v41 = vld [vmem:[#allocation14 + $0x308] sm:$0xf]  ;;  %v3364_v13 = vld [vmem:[#allocation14 + $0xe8] sm:$0xf0] }
 0x142   :  { %2358 = vmatpush.bf16.msrb.mxu2 %v3675_v62  ;;  %v3746_v62 = vld [vmem:[#allocation14 + $0x3c8] sm:$0xf] }
 0x143   :  { %2384 = vmatpush.bf16.msra.mxu0 %v3679_v2  ;;  %v3295_v2 = vor.u32 %v3944_v52, %v3292_v53  ;;  %v3747_v16 = vor.u32 %v4061_v63, %v3746_v62  ;;  %v4037_v32 = vld [vmem:[#allocation14 + $0x324] sm:$0xf0]  ;;  %v3969_v53 = vld [vmem:[#allocation14 + $0x10c] sm:$0xf]  ;;  %v3619_v63 = vor.u32 %v4029_v57, %v3618_v56  ;;  %v3722_v57 = vld [vmem:[#allocation14 + $0x390] sm:$0xf] }
 0x144   :  { %2372 = vmatpush.bf16.msrb.mxu3 %v3391_v26  ;;  %v3263_v26 = vor.u32 %v3936_v9, %v3260_v11  ;;  %v3651_v52 = vor.u32 %v4037_v32, %v3650_v41  ;;  %v3362_v9 = vld [vmem:[#allocation14 + $0xc8] sm:$0xf]  ;;  %v3961_v11 = vld [vmem:[#allocation14 + $0xcc] sm:$0xf]  ;;  %v1412_v41 = vld [vmem:[%s4523_s11] sm:$0x1] }
 0x146   :  { %2359 = vmatpush.bf16.msrb.mxu2 %v3643_v15  ;;  %v3519_v15 = vor.u32 %v4000_v59, %v3516_v61  ;;  %v4025_v59 = vld [vmem:[#allocation14 + $0x2cc] sm:$0xf] }
 0x147   :  { %2385 = vmatpush.bf16.msra.mxu0 %v3647_v19  ;;  %v3751_v19 = vor.u32 %v4057_v0, %v3748_v1  ;;  %v3586_v1 = vld [vmem:[#allocation14 + $0x288] sm:$0xf] }
 0x148   :  { %2373 = vmatpush.bf16.msrb.mxu3 %v3359_v42  ;;  %v3684_v42 = vld [vmem:[#allocation14 + $0x368] sm:$0xf0] }
 0x149   :  { %v3687_v47 = vor.u32 %v4041_v58, %v3684_v42  ;;  %v3300_v58 = vld [vmem:[#allocation14 + $0x68] sm:$0xf0] }
 0x14a   :  { %2360 = vmatpush.bf16.msrb.mxu2 %v3611_v28 }
 0x14c   :  { %2374 = vmatpush.bf16.msrb.mxu3 %v3327_v37  ;;  %v3652_v37 = vld [vmem:[#allocation14 + $0x328] sm:$0xf0] }
 0x14e   :  { %2361 = vmatpush.bf16.msrb.mxu2 %v3579_v44  ;;  %v3463_v44 = vor.u32 %v3985_v34, %v3460_v35  ;;  %v3298_v35 = vld [vmem:[#allocation14 + $0x48] sm:$0xf] }
 0x150   :  { %2375 = vmatpush.bf16.msrb.mxu3 %v3295_v2  ;;  %v4017_v2 = vld [vmem:[#allocation14 + $0x28c] sm:$0xf] }
 0x152   :  { %2362 = vmatpush.bf16.msrb.mxu2 %v3547_v50  ;;  %v3394_v50 = vld [vmem:[#allocation14 + $0x108] sm:$0xf] }
 0x154   :  { %2376 = vmatpush.bf16.msrb.mxu3 %v3263_v26  ;;  %v3332_v26 = vld [vmem:[#allocation14 + $0xa8] sm:$0xf0] }
 0x156   :  { %2363 = vmatpush.bf16.msrb.mxu2 %v3515_v10  ;;  %v3965_v10 = vld [vmem:[#allocation14 + $0xe4] sm:$0xf0] }
 0x157   :  { %v3363_v12 = vor.u32 %v3965_v10, %v3362_v9 }
 0x175   :  { %v4471_v22 = vpop.f32.mrf.mxu0 }
 0x176   :  { %v1312_v49 = vadd.f32 %v4079_v40, %v4471_v22  ;;  %v3291_v22 = vor.u32 %v3948_v51, %v3290_v48  ;;  %v4045_v40 = vld [vmem:[#allocation14 + $0x364] sm:$0xf0]  ;;  %v3427_v48 = vor.u32 %v3981_v46, %v3426_v45  ;;  %v3937_v46 = vld [vmem:[#allocation14 + $0xc] sm:$0xf] }
 0x177   :  { %v3683_v6 = vor.u32 %v4045_v40, %v3682_v39  ;;  %v3973_v51 = vld [vmem:[#allocation14 + $0x124] sm:$0xf0]  ;;  %v3945_v40 = vld [vmem:[#allocation14 + $0x4c] sm:$0xf] }
 0x178   :  { %2349 = vmatpush.bf16.msrb.mxu1 %v3291_v22  ;;  %v3395_v61 = vor.u32 %v3973_v51, %v3394_v50  ;;  %v4021_v22 = vld [vmem:[#allocation14 + $0x2a4] sm:$0xf0]  ;;  %v3303_v42 = vor.u32 %v3945_v40, %v3300_v58  ;;  %v3756_v50 = vld [vmem:[#allocation14 + $0x3f0] sm:$0xf0]  ;;  %v4080_v51 = vld [vmem:[%s4522_s10] ss:$0 sm:$0xff] }
 0x179   :  { %v3434_v58 = vld [vmem:[#allocation14 + $0x150] sm:$0xf] }
 0x17d   :  { %v1313_v23 = vpop.f32.mrf.mxu0 }
 0x17e   :  { %v4024_v23 = vld [vmem:[#allocation14 + $0x2c4] sm:$0xf] }
 0x17f   :  { %v3615_v33 = vor.u32 %v4024_v23, %v3612_v24  ;;  %v3259_v23 = vor.u32 %v3940_v5, %v3258_v3  ;;  %v4049_v24 = vld [vmem:[#allocation14 + $0x38c] sm:$0xf] }
 0x180   :  { %v3719_v38 = vor.u32 %v4049_v24, %v3716_v25  ;;  %v3588_v3 = vld [vmem:[#allocation14 + $0x2a8] sm:$0xf0] }
 0x181   :  { %2386 = vmatpush.bf16.msra.mxu0 %v3615_v33  ;;  %v3715_v33 = vor.u32 %v4053_v21, %v3714_v20  ;;  %2350 = vmatpush.bf16.msrb.mxu1 %v3259_v23  ;;  %v3591_v5 = vor.u32 %v4017_v2, %v3588_v3  ;;  %v3330_v21 = vld [vmem:[#allocation14 + $0x88] sm:$0xf]  ;;  %v3953_v24 = vld [vmem:[#allocation14 + $0x8c] sm:$0xf]  ;;  %v3498_v3 = vld [vmem:[#allocation14 + $0x1d0] sm:$0xf] }
 0x182   :  { %v3957_v23 = vld [vmem:[#allocation14 + $0xa4] sm:$0xf0] }
 0x183   :  { %v3331_v25 = vor.u32 %v3957_v23, %v3330_v21 }
 0x185   :  { %2387 = vmatpush.bf16.msra.mxu0 %v3583_v7  ;;  %2395 = vmatpush.bf16.msra.mxu1 %v3491_v27  ;;  %v3977_v7 = vld [vmem:[#allocation14 + $0x14c] sm:$0xf]  ;;  %v3335_v27 = vor.u32 %v3953_v24, %v3332_v26  ;;  %v3466_v24 = vld [vmem:[#allocation14 + $0x190] sm:$0xf] }
 0x189   :  { %2388 = vmatpush.bf16.msra.mxu0 %v3551_v55  ;;  %2396 = vmatpush.bf16.msra.mxu1 %v3459_v43  ;;  %v3655_v55 = vor.u32 %v4033_v8, %v3652_v37  ;;  %v3266_v43 = vld [vmem:[#allocation14 + $0x8] sm:$0xf]  ;;  %v3754_v8 = vld [vmem:[#allocation14 + $0x3d0] sm:$0xf] }
 0x18d   :  { %2389 = vmatpush.bf16.msra.mxu0 %v3519_v15  ;;  %2397 = vmatpush.bf16.msra.mxu1 %v3427_v48  ;;  %v3554_v15 = vld [vmem:[#allocation14 + $0x248] sm:$0xf]  ;;  %v4062_v48 = vld [vmem:[#allocation14 + $0x3ec] sm:$0xf0] }
 0x191   :  { %2398 = vmatpush.bf16.msra.mxu1 %v3395_v61 }
 0x195   :  { %2399 = vmatpush.bf16.msra.mxu1 %v3363_v12 }
 0x199   :  { %2400 = vmatpush.bf16.msra.mxu1 %v3331_v25  ;;  %v3990_v25 = vld [vmem:[#allocation14 + $0x1ac] sm:$0xf0] }
 0x1b5   :  { %v1324_v54 = vpop.f32.mrf.mxu1 }
 0x1b6   :  { %v1325_v60 = vadd.f32 %v1324_v54, %v1312_v49  ;;  %v3431_v49 = vor.u32 %v3977_v7, %v3428_v36  ;;  %v3396_v54 = vld [vmem:[#allocation14 + $0x128] sm:$0xf0]  ;;  %v1441_v36 = vld [vmem:[#allocation12] sm:$0x3] }
 0x1b7   :  { %v3399_v62 = vor.u32 %v3969_v53, %v3396_v54  ;;  %v1413_v53 = vunpack.c.l.bf16 %v1412_v41  ;;  %v3628_v41 = vld [vmem:[#allocation14 + $0x2f0] sm:$0xf0] }
 0x1b8   :  { %v1328_v4 = vmax.f32 %v1325_v60, 0.0  ;;  %v3620_v60 = vld [vmem:[#allocation14 + $0x2e8] sm:$0xf0] }
 0x1b9   :  { %v3623_v0 = vor.u32 %v4025_v59, %v3620_v60  ;;  %v1414_v2 = vperm.slane %v1413_v53, 0  ;;  %v4022_v53 = vld [vmem:[#allocation14 + $0x2ac] sm:$0xf0] }
 0x1ba   :  { %v1329_v14 = vpack.c.bf16 %v1328_v4, %v1328_v4  ;;  %v3587_v4 = vor.u32 %v4021_v22, %v3586_v1 }
 0x1bc   :  { %1406 = vmatmul.bf16.vlgmr.msra.gmra.mxu2 %v1329_v14  ;;  %1535 = vmatmul.bf16.vlgmr.msra.gmra.mxu3 %v1329_v14 }
 0x1bd   :  { %1548 = vmatmul.bf16.vlgmr.msrb.gmra.mxu0 %v1329_v14  ;;  %v1326_v28 = vpop.f32.mrf.mxu1  ;;  %2408 = vmatpush.bf16.msra.mxu2 %v3747_v16  ;;  %v3367_v14 = vor.u32 %v3961_v11, %v3364_v13  ;;  %v4013_v16 = vld [vmem:[#allocation14 + $0x264] sm:$0xf0] }
 0x1be   :  { %2434 = vmatpush.bf16.msrb.mxu0 %v3751_v19  ;;  %2421 = vmatpush.bf16.msra.mxu3 %v3495_v29  ;;  %v3555_v18 = vor.u32 %v4013_v16, %v3554_v15  ;;  %v3556_v19 = vld [vmem:[#allocation14 + $0x268] sm:$0xf0]  ;;  %v3522_v28 = vld [vmem:[#allocation14 + $0x208] sm:$0xf]  ;;  %v3690_v15 = vld [vmem:[#allocation14 + $0x350] sm:$0xf] }
 0x1bf   :  { %v3559_v20 = vor.u32 %v4009_v17, %v3556_v19  ;;  %v4005_v29 = vld [vmem:[#allocation14 + $0x224] sm:$0xf0]  ;;  %v4046_v16 = vld [vmem:[#allocation14 + $0x36c] sm:$0xf0]  ;;  %v4042_v17 = vld [vmem:[#allocation14 + $0x354] sm:$0xf] }
 0x1c0   :  { %v3523_v31 = vor.u32 %v4005_v29, %v3522_v28  ;;  %v3691_v26 = vor.u32 %v4046_v16, %v3690_v15  ;;  %v3986_v28 = vld [vmem:[#allocation14 + $0x194] sm:$0xf]  ;;  %v3530_v15 = vld [vmem:[#allocation14 + $0x210] sm:$0xf] }
 0x1c1   :  { %2409 = vmatpush.bf16.msra.mxu2 %v3715_v33  ;;  %v3524_v33 = vld [vmem:[#allocation14 + $0x228] sm:$0xf0]  ;;  %v3468_v29 = vld [vmem:[#allocation14 + $0x1b0] sm:$0xf0] }
 0x1c2   :  { %2435 = vmatpush.bf16.msrb.mxu0 %v3719_v38  ;;  %2422 = vmatpush.bf16.msra.mxu3 %v3463_v44  ;;  %v3527_v34 = vor.u32 %v4001_v30, %v3524_v33  ;;  %v3949_v38 = vld [vmem:[#allocation14 + $0x64] sm:$0xf0]  ;;  %v3658_v30 = vld [vmem:[#allocation14 + $0x310] sm:$0xf]  ;;  %v3471_v40 = vor.u32 %v3986_v28, %v3468_v29 }
 0x1c3   :  { %v3299_v39 = vor.u32 %v3949_v38, %v3298_v35  ;;  %v3941_v44 = vld [vmem:[#allocation14 + $0x24] sm:$0xf0]  ;;  %v4034_v35 = vld [vmem:[#allocation14 + $0x314] sm:$0xf]  ;;  %v3306_v28 = vld [vmem:[#allocation14 + $0x50] sm:$0xf] }
 0x1c4   :  { %v3267_v45 = vor.u32 %v3941_v44, %v3266_v43  ;;  %v3660_v38 = vld [vmem:[#allocation14 + $0x330] sm:$0xf0]  ;;  %v3950_v29 = vld [vmem:[#allocation14 + $0x6c] sm:$0xf0] }
 0x1c5   :  { %2410 = vmatpush.bf16.msra.mxu2 %v3683_v6  ;;  %2401 = vmatpush.bf16.msra.mxu1 %v3299_v39  ;;  %v3268_v6 = vld [vmem:[#allocation14 + $0x28] sm:$0xf0]  ;;  %v3467_v39 = vor.u32 %v3990_v25, %v3466_v24  ;;  %v3663_v44 = vor.u32 %v4034_v35, %v3660_v38  ;;  %v4063_v24 = vld [vmem:[#allocation14 + $0x3f4] sm:$0xf0]  ;;  %v4059_v25 = vld [vmem:[#allocation14 + $0x3dc] sm:$0xf] }
 0x1c6   :  { %2436 = vmatpush.bf16.msrb.mxu0 %v3687_v47  ;;  %2423 = vmatpush.bf16.msra.mxu3 %v3431_v49  ;;  %v3271_v7 = vor.u32 %v3937_v46, %v3268_v6  ;;  %v1444_v47 = vperm.slane %v1441_v36, 1  ;;  %v4058_v49 = vld [vmem:[#allocation14 + $0x3d4] sm:$0xf]  ;;  %v3626_v6 = vld [vmem:[#allocation14 + $0x2d0] sm:$0xf] }
 0x1c7   :  { %v3759_v56 = vor.u32 %v4058_v49, %v3756_v50  ;;  %v3436_v46 = vld [vmem:[#allocation14 + $0x170] sm:$0xf0]  ;;  %v3730_v38 = vld [vmem:[#allocation14 + $0x398] sm:$0xf] }
 0x1c8   :  { %v3970_v49 = vld [vmem:[#allocation14 + $0x114] sm:$0xf] }
 0x1c9   :  { %2411 = vmatpush.bf16.msra.mxu2 %v3651_v52  ;;  %2402 = vmatpush.bf16.msra.mxu1 %v3267_v45  ;;  %v1443_v52 = vperm.slane %v1441_v36, 0  ;;  %v3978_v45 = vld [vmem:[#allocation14 + $0x154] sm:$0xf] }
 0x1ca   :  { %2437 = vmatpush.bf16.msrb.mxu0 %v3655_v55  ;;  %2424 = vmatpush.bf16.msra.mxu3 %v3399_v62  ;;  %v3755_v55 = vor.u32 %v4062_v48, %v3754_v8  ;;  %v4054_v62 = vld [vmem:[#allocation14 + $0x3ac] sm:$0xf0]  ;;  %v3404_v50 = vld [vmem:[#allocation14 + $0x130] sm:$0xf0] }
 0x1cb   :  { %v3723_v12 = vor.u32 %v4054_v62, %v3722_v57  ;;  %v3402_v8 = vld [vmem:[#allocation14 + $0x110] sm:$0xf]  ;;  %v3407_v57 = vor.u32 %v3970_v49, %v3404_v50  ;;  %v3698_v49 = vld [vmem:[#allocation14 + $0x358] sm:$0xf] }
 0x1cc   :  { %v4047_v50 = vld [vmem:[#allocation14 + $0x374] sm:$0xf0] }
 0x1cd   :  { %2412 = vmatpush.bf16.msra.mxu2 %v3619_v63  ;;  %v4050_v63 = vld [vmem:[#allocation14 + $0x394] sm:$0xf] }
 0x1ce   :  { %2438 = vmatpush.bf16.msrb.mxu0 %v3623_v0  ;;  %2425 = vmatpush.bf16.msra.mxu3 %v3367_v14  ;;  %v3724_v0 = vld [vmem:[#allocation14 + $0x3b0] sm:$0xf0] }
 0x1cf   :  { %v3727_v13 = vor.u32 %v4050_v63, %v3724_v0  ;;  %v3500_v14 = vld [vmem:[#allocation14 + $0x1f0] sm:$0xf0] }
 0x1d0   :  { %v3962_v63 = vld [vmem:[#allocation14 + $0xd4] sm:$0xf] }
 0x1d1   :  { %2413 = vmatpush.bf16.msra.mxu2 %v3587_v4  ;;  %v3998_v4 = vld [vmem:[#allocation14 + $0x1ec] sm:$0xf0]  ;;  %v3372_v0 = vld [vmem:[#allocation14 + $0xf0] sm:$0xf0] }
 0x1d2   :  { %2439 = vmatpush.bf16.msrb.mxu0 %v3591_v5  ;;  %2426 = vmatpush.bf16.msra.mxu3 %v3335_v27  ;;  %v3994_v5 = vld [vmem:[#allocation14 + $0x1d4] sm:$0xf]  ;;  %v3499_v21 = vor.u32 %v3998_v4, %v3498_v3 }
 0x1d3   :  { %v3503_v23 = vor.u32 %v3994_v5, %v3500_v14  ;;  %v4010_v4 = vld [vmem:[#allocation14 + $0x254] sm:$0xf] }
 0x1d4   :  { %v3564_v5 = vld [vmem:[#allocation14 + $0x270] sm:$0xf0] }
 0x1d5   :  { %2414 = vmatpush.bf16.msra.mxu2 %v3555_v18  ;;  %v3692_v18 = vld [vmem:[#allocation14 + $0x370] sm:$0xf0]  ;;  %v3567_v16 = vor.u32 %v4010_v4, %v3564_v5  ;;  %v3442_v5 = vld [vmem:[#allocation14 + $0x158] sm:$0xf] }
 0x1d6   :  { %2440 = vmatpush.bf16.msrb.mxu0 %v3559_v20  ;;  %2427 = vmatpush.bf16.msra.mxu3 %v3303_v42  ;;  %v3695_v27 = vor.u32 %v4042_v17, %v3692_v18  ;;  %v3982_v42 = vld [vmem:[#allocation14 + $0x16c] sm:$0xf0]  ;;  %v3340_v14 = vld [vmem:[#allocation14 + $0xb0] sm:$0xf0] }
 0x1d7   :  { %v3435_v36 = vor.u32 %v3982_v42, %v3434_v58  ;;  %v4006_v17 = vld [vmem:[#allocation14 + $0x22c] sm:$0xf0]  ;;  %v4002_v18 = vld [vmem:[#allocation14 + $0x214] sm:$0xf]  ;;  %v4055_v58 = vld [vmem:[#allocation14 + $0x3b4] sm:$0xf0] }
 0x1d8   :  { %v4051_v42 = vld [vmem:[#allocation14 + $0x39c] sm:$0xf] }
 0x1d9   :  { %2415 = vmatpush.bf16.msra.mxu2 %v3523_v31 }
 0x1da   :  { %2441 = vmatpush.bf16.msrb.mxu0 %v3527_v34  ;;  %2428 = vmatpush.bf16.msra.mxu3 %v3271_v7  ;;  %v4038_v34 = vld [vmem:[#allocation14 + $0x32c] sm:$0xf0] }
 0x1db   :  { %v3659_v43 = vor.u32 %v4038_v34, %v3658_v30  ;;  %v4030_v7 = vld [vmem:[#allocation14 + $0x2ec] sm:$0xf0]  ;;  %v3531_v30 = vor.u32 %v4006_v17, %v3530_v15  ;;  %v4031_v15 = vld [vmem:[#allocation14 + $0x2f4] sm:$0xf0]  ;;  %v4027_v17 = vld [vmem:[#allocation14 + $0x2dc] sm:$0xf] }
 0x1dc   :  { %v3627_v48 = vor.u32 %v4030_v7, %v3626_v6  ;;  %v3938_v6 = vld [vmem:[#allocation14 + $0x14] sm:$0xf] }
 0x1dd   :  { %v3276_v7 = vld [vmem:[#allocation14 + $0x30] sm:$0xf0] }
 0x23a   :  { %v1549_v32 = vpop.f32.mrf.mxu0 }
 0x23b   :  { %v1550_v37 = vadd.f32 %v1549_v32, %v1444_v47  ;;  %v4026_v47 = vld [vmem:[#allocation14 + $0x2d4] sm:$0xf]  ;;  %v3439_v32 = vor.u32 %v3978_v45, %v3436_v46  ;;  %v3274_v45 = vld [vmem:[#allocation14 + $0x10] sm:$0xf] }
 0x23c   :  { %v3942_v46 = vld [vmem:[#allocation14 + $0x2c] sm:$0xf0] }
 0x23d   :  { %v1554_v54 = vmax.f32 %v1550_v37, 0.0  ;;  %v3974_v37 = vld [vmem:[#allocation14 + $0x12c] sm:$0xf0] }
 0x23f   :  { %v4483_v59 = vpack.c.bf16 %v1554_v54, %v1554_v54  ;;  %v1407_v60 = vpop.f32.mrf.mxu2  ;;  %v1536_v61 = vpop.f32.mrf.mxu3  ;;  %v3403_v54 = vor.u32 %v3974_v37, %v3402_v8  ;;  %v3508_v8 = vld [vmem:[#allocation14 + $0x1f8] sm:$0xf0] }
 0x240   :  { %v1408_v1 = vadd.f32 %v4080_v51, %v1407_v60  ;;  %v1537_v22 = vadd.f32 %v1536_v61, %v1443_v52  ;;  %v3631_v51 = vor.u32 %v4026_v47, %v3628_v41  ;;  %v3594_v52 = vld [vmem:[#allocation14 + $0x290] sm:$0xf]  ;;  %v3999_v47 = vld [vmem:[#allocation14 + $0x1f4] sm:$0xf0]  ;;  %v3731_v41 = vor.u32 %v4055_v58, %v3730_v38  ;;  %v3380_v58 = vld [vmem:[#allocation14 + $0xf8] sm:$0xf0] }
 0x241   :  { %2364 = vmatmul.bf16.vlgmr.msrb.gmra.mxu2 %v4483_v59  ;;  %2390 = vmatmul.bf16.vlgmr.msra.gmra.mxu0 %v4483_v59  ;;  %v3370_v60 = vld [vmem:[#allocation14 + $0xd0] sm:$0xf]  ;;  %v3595_v62 = vor.u32 %v4022_v53, %v3594_v52  ;;  %v4043_v53 = vld [vmem:[#allocation14 + $0x35c] sm:$0xf]  ;;  %v3967_v38 = vld [vmem:[#allocation14 + $0xf4] sm:$0xf0] }
 0x242   :  { %v1411_v9 = vmax.f32 %v1408_v1, 0.0  ;;  %v1553_v10 = vmax.f32 %v1537_v22, 0.0  ;;  %2460 = vmatpush.bf16.msrb.mxu2 %v3755_v55  ;;  %2486 = vmatpush.bf16.msra.mxu0 %v3759_v56  ;;  %v1551_v11 = vpop.f32.mrf.mxu0  ;;  %v4018_v55 = vld [vmem:[#allocation14 + $0x294] sm:$0xf]  ;;  %v3966_v61 = vld [vmem:[#allocation14 + $0xec] sm:$0xf0] }
 0x243   :  { %v3596_v56 = vld [vmem:[#allocation14 + $0x2b0] sm:$0xf0]  ;;  %v3562_v22 = vld [vmem:[#allocation14 + $0x250] sm:$0xf]  ;;  %v3371_v3 = vor.u32 %v3966_v61, %v3370_v60  ;;  %v3699_v60 = vor.u32 %v4047_v50, %v3698_v49  ;;  %v3987_v61 = vld [vmem:[#allocation14 + $0x19c] sm:$0xf] }
 0x244   :  { %v4487_v19 = vpack.c.bf16 %v1553_v10, %v1553_v10  ;;  %v1415_v20 = vmul.f32 %v1414_v2, %v1411_v9  ;;  %v3599_v1 = vor.u32 %v4018_v55, %v3596_v56  ;;  %v4014_v2 = vld [vmem:[#allocation14 + $0x26c] sm:$0xf0]  ;;  %v3375_v9 = vor.u32 %v3962_v63, %v3372_v0  ;;  %v3474_v56 = vld [vmem:[#allocation14 + $0x198] sm:$0xf] }
 0x245   :  { %v3338_v10 = vld [vmem:[#allocation14 + $0x90] sm:$0xf]  ;;  %v3666_v0 = vld [vmem:[#allocation14 + $0x318] sm:$0xf] }
 0x246   :  { %2461 = vmatpush.bf16.msrb.mxu2 %v3723_v12  ;;  %2487 = vmatpush.bf16.msra.mxu0 %v3727_v13  ;;  %v3958_v11 = vld [vmem:[#allocation14 + $0xac] sm:$0xf0]  ;;  %v3563_v12 = vor.u32 %v4014_v2, %v3562_v22  ;;  %v3954_v13 = vld [vmem:[#allocation14 + $0x94] sm:$0xf]  ;;  %v4035_v2 = vld [vmem:[#allocation14 + $0x31c] sm:$0xf] }
 0x247   :  { %1416 = vadd.xlane.f32.xlu0 %v1415_v20  ;;  %2351 = vmatmul.bf16.vlgmr.msrb.gmra.mxu1 %v4487_v19  ;;  %v1409_v31 = vpop.f32.mrf.mxu2  ;;  %v1538_v33 = vpop.f32.mrf.mxu3  ;;  %v3532_v20 = vld [vmem:[#allocation14 + $0x230] sm:$0xf0]  ;;  %v4007_v49 = vld [vmem:[#allocation14 + $0x234] sm:$0xf0] }
 0x248   :  { %2377 = vmatmul.bf16.vlgmr.msrb.gmra.mxu3 %v4487_v19  ;;  %2447 = vmatpush.bf16.msrb.mxu1 %v3499_v21  ;;  %v3339_v21 = vor.u32 %v3958_v11, %v3338_v10  ;;  %v3946_v31 = vld [vmem:[#allocation14 + $0x54] sm:$0xf]  ;;  %v3535_v34 = vor.u32 %v4002_v18, %v3532_v20  ;;  %v3979_v11 = vld [vmem:[#allocation14 + $0x15c] sm:$0xf] }
 0x249   :  { %2473 = vmatpush.bf16.msrb.mxu3 %v3503_v23  ;;  %v3762_v23 = vld [vmem:[#allocation14 + $0x3d8] sm:$0xf]  ;;  %v3308_v33 = vld [vmem:[#allocation14 + $0x70] sm:$0xf0]  ;;  %v3636_v18 = vld [vmem:[#allocation14 + $0x2f8] sm:$0xf0] }
 0x24a   :  { %2462 = vmatpush.bf16.msrb.mxu2 %v3691_v26  ;;  %2488 = vmatpush.bf16.msra.mxu0 %v3695_v27  ;;  %v3343_v26 = vor.u32 %v3954_v13, %v3340_v14  ;;  %v3764_v27 = vld [vmem:[#allocation14 + $0x3f8] sm:$0xf0]  ;;  %v3763_v35 = vor.u32 %v4063_v24, %v3762_v23  ;;  %v3634_v14 = vld [vmem:[#allocation14 + $0x2d8] sm:$0xf] }
 0x24b   :  { %v3975_v23 = vld [vmem:[#allocation14 + $0x134] sm:$0xf0]  ;;  %v3635_v24 = vor.u32 %v4031_v15, %v3634_v14 }
 0x24c   :  { %2448 = vmatpush.bf16.msrb.mxu1 %v3467_v39  ;;  %v3767_v39 = vor.u32 %v4059_v25, %v3764_v27  ;;  %v3971_v25 = vld [vmem:[#allocation14 + $0x11c] sm:$0xf]  ;;  %v3639_v27 = vor.u32 %v4027_v17, %v3636_v18 }
 0x24d   :  { %2474 = vmatpush.bf16.msrb.mxu3 %v3471_v40  ;;  %v3307_v40 = vor.u32 %v3950_v29, %v3306_v28  ;;  %v3602_v28 = vld [vmem:[#allocation14 + $0x298] sm:$0xf] }
 0x24e   :  { %2463 = vmatpush.bf16.msrb.mxu2 %v3659_v43  ;;  %2489 = vmatpush.bf16.msra.mxu0 %v3663_v44  ;;  %v3732_v43 = vld [vmem:[#allocation14 + $0x3b8] sm:$0xf0]  ;;  %v3311_v44 = vor.u32 %v3946_v31, %v3308_v33  ;;  %v4023_v29 = vld [vmem:[#allocation14 + $0x2b4] sm:$0xf0] }
 0x24f   :  { %v3735_v37 = vor.u32 %v4051_v42, %v3732_v43  ;;  %v4019_v31 = vld [vmem:[#allocation14 + $0x29c] sm:$0xf]  ;;  %v3570_v43 = vld [vmem:[#allocation14 + $0x258] sm:$0xf] }
 0x250   :  { %2449 = vmatpush.bf16.msrb.mxu1 %v3435_v36  ;;  %v3506_v36 = vld [vmem:[#allocation14 + $0x1d8] sm:$0xf]  ;;  %v3604_v33 = vld [vmem:[#allocation14 + $0x2b8] sm:$0xf0] }
 0x251   :  { %2475 = vmatpush.bf16.msrb.mxu3 %v3439_v32  ;;  %2416 = vmatmul.bf16.vlgmr.msra.gmra.mxu2 %v4483_v59  ;;  %v3995_v32 = vld [vmem:[#allocation14 + $0x1dc] sm:$0xf]  ;;  %v3507_v52 = vor.u32 %v3999_v47, %v3506_v36  ;;  %v3607_v42 = vor.u32 %v4019_v31, %v3604_v33  ;;  %v3346_v36 = vld [vmem:[#allocation14 + $0x98] sm:$0xf] }
 0x252   :  { %2442 = vmatmul.bf16.vlgmr.msrb.gmra.mxu0 %v4483_v59  ;;  %2464 = vmatpush.bf16.msrb.mxu2 %v3627_v48  ;;  %v3275_v48 = vor.u32 %v3942_v46, %v3274_v45  ;;  %v3511_v55 = vor.u32 %v3995_v32, %v3508_v8  ;;  %v4011_v46 = vld [vmem:[#allocation14 + $0x25c] sm:$0xf]  ;;  %v3959_v47 = vld [vmem:[#allocation14 + $0xb4] sm:$0xf0] }
 0x253   :  { %2490 = vmatpush.bf16.msra.mxu0 %v3631_v51  ;;  %v3279_v51 = vor.u32 %v3938_v6, %v3276_v7  ;;  %v3572_v6 = vld [vmem:[#allocation14 + $0x278] sm:$0xf0]  ;;  %v3347_v50 = vor.u32 %v3959_v47, %v3346_v36 }
 0x254   :  { %2450 = vmatpush.bf16.msrb.mxu1 %v3403_v54  ;;  %v3700_v54 = vld [vmem:[#allocation14 + $0x378] sm:$0xf0] }
 0x255   :  { %2476 = vmatpush.bf16.msrb.mxu3 %v3407_v57  ;;  %v3991_v57 = vld [vmem:[#allocation14 + $0x1b4] sm:$0xf0]  ;;  %v3703_v63 = vor.u32 %v4043_v53, %v3700_v54  ;;  %v3955_v32 = vld [vmem:[#allocation14 + $0x9c] sm:$0xf] }
 0x256   :  { %2465 = vmatpush.bf16.msrb.mxu2 %v3595_v62  ;;  %v3476_v62 = vld [vmem:[#allocation14 + $0x1b8] sm:$0xf0]  ;;  %v3475_v22 = vor.u32 %v3991_v57, %v3474_v56  ;;  %v3314_v54 = vld [vmem:[#allocation14 + $0x58] sm:$0xf] }
 0x257   :  { %2491 = vmatpush.bf16.msra.mxu0 %v3599_v1  ;;  %2403 = vmatmul.bf16.vlgmr.msra.gmra.mxu1 %v4487_v19  ;;  %v4039_v1 = vld [vmem:[#allocation14 + $0x334] sm:$0xf0]  ;;  %v3479_v4 = vor.u32 %v3987_v61, %v3476_v62  ;;  %v3348_v8 = vld [vmem:[#allocation14 + $0xb8] sm:$0xf0] }
 0x258   :  { %2429 = vmatmul.bf16.vlgmr.msra.gmra.mxu3 %v4487_v19  ;;  %2451 = vmatpush.bf16.msrb.mxu1 %v3371_v3  ;;  %v3668_v3 = vld [vmem:[#allocation14 + $0x338] sm:$0xf0]  ;;  %v3667_v10 = vor.u32 %v4039_v1, %v3666_v0  ;;  %v3351_v53 = vor.u32 %v3955_v32, %v3348_v8  ;;  %v3282_v0 = vld [vmem:[#allocation14 + $0x18] sm:$0xf] }
 0x259   :  { %2477 = vmatpush.bf16.msrb.mxu3 %v3375_v9  ;;  %v3983_v9 = vld [vmem:[#allocation14 + $0x174] sm:$0xf0]  ;;  %v3671_v13 = vor.u32 %v4035_v2, %v3668_v3  ;;  %v3947_v57 = vld [vmem:[#allocation14 + $0x5c] sm:$0xf] }
 0x25a   :  { %2466 = vmatpush.bf16.msrb.mxu2 %v3563_v12  ;;  %v3444_v12 = vld [vmem:[#allocation14 + $0x178] sm:$0xf0]  ;;  %v3943_v1 = vld [vmem:[#allocation14 + $0x34] sm:$0xf0] }
 0x25b   :  { %2492 = vmatpush.bf16.msra.mxu0 %v3567_v16  ;;  %v3443_v16 = vor.u32 %v3983_v9, %v3442_v5  ;;  %v3447_v20 = vor.u32 %v3979_v11, %v3444_v12  ;;  %v3284_v2 = vld [vmem:[#allocation14 + $0x38] sm:$0xf0]  ;;  %v3283_v3 = vor.u32 %v3943_v1, %v3282_v0  ;;  %v4081_v5 = vld [vmem:[#allocation2] ss:$0 sm:$0xff] }
 0x25c   :  { %2452 = vmatpush.bf16.msrb.mxu1 %v3339_v21  ;;  %v3410_v21 = vld [vmem:[#allocation14 + $0x118] sm:$0xf] }
 0x25d   :  { %2478 = vmatpush.bf16.msrb.mxu3 %v3343_v26  ;;  %v3412_v26 = vld [vmem:[#allocation14 + $0x138] sm:$0xf0] }
 0x25e   :  { %2467 = vmatpush.bf16.msrb.mxu2 %v3531_v30  ;;  %v3411_v30 = vor.u32 %v3975_v23, %v3410_v21  ;;  %v1685_v12 = vld [vmem:[%s4520_s8] sm:$0xff]  ;;  %s4324_s8 = smov [#allocation17]  }
 0x25f   :  { %2493 = vmatpush.bf16.msra.mxu0 %v3535_v34  ;;  %v3415_v34 = vor.u32 %v3971_v25, %v3412_v26  ;;  %v1689_v26 = vperm.slane %v1685_v12, 2  ;;  %v1692_v47 = vperm.slane %v1685_v12, 5 }
 0x260   :  { %2453 = vmatpush.bf16.msrb.mxu1 %v3307_v40  ;;  %v3963_v40 = vld [vmem:[#allocation14 + $0xdc] sm:$0xf] }
 0x261   :  { %2479 = vmatpush.bf16.msrb.mxu3 %v3311_v44  ;;  %2468 = vmatmul.bf16.vlgmr.msrb.gmra.mxu2 %v4483_v59  ;;  %v4015_v44 = vld [vmem:[#allocation14 + $0x274] sm:$0xf0]  ;;  %v3383_v7 = vor.u32 %v3963_v40, %v3380_v58 }
 0x262   :  { %2512 = vmatpush.bf16.msra.mxu2 %v3763_v35  ;;  %2494 = vmatmul.bf16.vlgmr.msra.gmra.mxu0 %v4483_v59  ;;  %v3378_v35 = vld [vmem:[#allocation14 + $0xd8] sm:$0xf] }
 0x263   :  { %2538 = vmatpush.bf16.msrb.mxu0 %v3767_v39  ;;  %v3603_v39 = vor.u32 %v4023_v29, %v3602_v28  ;;  %v3379_v45 = vor.u32 %v3967_v38, %v3378_v35 }
 0x264   :  { %2454 = vmatpush.bf16.msrb.mxu1 %v3275_v48  ;;  %v3538_v48 = vld [vmem:[#allocation14 + $0x218] sm:$0xf] }
 0x265   :  { %2480 = vmatpush.bf16.msrb.mxu3 %v3279_v51  ;;  %v4003_v51 = vld [vmem:[#allocation14 + $0x21c] sm:$0xf]  ;;  %v3539_v56 = vor.u32 %v4007_v49, %v3538_v48 }
 0x266   :  { %2513 = vmatpush.bf16.msra.mxu2 %v3731_v41  ;;  %v3571_v41 = vor.u32 %v4015_v44, %v3570_v43  ;;  %v1691_v43 = vperm.slane %v1685_v12, 4 }
 0x267   :  { %2539 = vmatpush.bf16.msrb.mxu0 %v3735_v37  ;;  %2455 = vmatmul.bf16.vlgmr.msrb.gmra.mxu1 %v4487_v19  ;;  %v3575_v37 = vor.u32 %v4011_v46, %v3572_v6 }
 0x268   :  { %2499 = vmatpush.bf16.msra.mxu1 %v3507_v52  ;;  %2481 = vmatmul.bf16.vlgmr.msrb.gmra.mxu3 %v4487_v19  ;;  %v3540_v52 = vld [vmem:[#allocation14 + $0x238] sm:$0xf0] }
 0x269   :  { %2525 = vmatpush.bf16.msra.mxu3 %v3511_v55  ;;  %v3951_v55 = vld [vmem:[#allocation14 + $0x74] sm:$0xf0]  ;;  %v3543_v61 = vor.u32 %v4003_v51, %v3540_v52  ;;  %v1693_v51 = vperm.slane %v1685_v12, 6 }
 0x26a   :  { %2514 = vmatpush.bf16.msra.mxu2 %v3699_v60  ;;  %v3316_v60 = vld [vmem:[#allocation14 + $0x78] sm:$0xf0]  ;;  %v3315_v62 = vor.u32 %v3951_v55, %v3314_v54 }
 0x26b   :  { %2540 = vmatpush.bf16.msrb.mxu0 %v3703_v63  ;;  %v3319_v63 = vor.u32 %v3947_v57, %v3316_v60  ;;  %v1694_v57 = vperm.slane %v1685_v12, 7 }
 0x26c   :  { %2500 = vmatpush.bf16.msra.mxu1 %v3475_v22  ;;  %v3939_v22 = vld [vmem:[#allocation14 + $0x1c] sm:$0xf] }
 0x26d   :  { %2526 = vmatpush.bf16.msra.mxu3 %v3479_v4  ;;  %v3287_v4 = vor.u32 %v3939_v22, %v3284_v2 }
 0x26e   :  { %2515 = vmatpush.bf16.msra.mxu2 %v3667_v10 }
 0x26f   :  { %2541 = vmatpush.bf16.msrb.mxu0 %v3671_v13 }
 0x270   :  { %2501 = vmatpush.bf16.msra.mxu1 %v3443_v16 }
 0x271   :  { %2527 = vmatpush.bf16.msra.mxu3 %v3447_v20 }
 0x272   :  { %2516 = vmatpush.bf16.msra.mxu2 %v3635_v24 }
 0x273   :  { %2542 = vmatpush.bf16.msrb.mxu0 %v3639_v27 }
 0x274   :  { %2502 = vmatpush.bf16.msra.mxu1 %v3411_v30 }
 0x275   :  { %2528 = vmatpush.bf16.msra.mxu3 %v3415_v34  ;;  %v1690_v34 = vperm.slane %v1685_v12, 3 }
 0x276   :  { %2517 = vmatpush.bf16.msra.mxu2 %v3603_v39 }
 0x277   :  { %2543 = vmatpush.bf16.msrb.mxu0 %v3607_v42 }
 0x278   :  { %2503 = vmatpush.bf16.msra.mxu1 %v3379_v45 }
 0x279   :  { %2529 = vmatpush.bf16.msra.mxu3 %v3383_v7 }
 0x27a   :  { %2518 = vmatpush.bf16.msra.mxu2 %v3571_v41 }
 0x27b   :  { %2544 = vmatpush.bf16.msrb.mxu0 %v3575_v37 }
 0x27c   :  { %2504 = vmatpush.bf16.msra.mxu1 %v3347_v50 }
 0x27d   :  { %2530 = vmatpush.bf16.msra.mxu3 %v3351_v53 }
 0x27e   :  { %2519 = vmatpush.bf16.msra.mxu2 %v3539_v56 }
 0x27f   :  { %2545 = vmatpush.bf16.msrb.mxu0 %v3543_v61 }
 0x280   :  { %2505 = vmatpush.bf16.msra.mxu1 %v3315_v62 }
 0x281   :  { %2531 = vmatpush.bf16.msra.mxu3 %v3319_v63  ;;  %2520 = vmatmul.bf16.vlgmr.msra.gmra.mxu2 %v4483_v59 }
 0x282   :  { %2546 = vmatmul.bf16.vlgmr.msrb.gmra.mxu0 %v4483_v59  ;;  %v1687_v59 = vperm.slane %v1685_v12, 0 }
 0x284   :  { %2506 = vmatpush.bf16.msra.mxu1 %v3283_v3 }
 0x285   :  { %2532 = vmatpush.bf16.msra.mxu3 %v3287_v4 }
 0x287   :  { %2507 = vmatmul.bf16.vlgmr.msra.gmra.mxu1 %v4487_v19 }
 0x288   :  { %2533 = vmatmul.bf16.vlgmr.msra.gmra.mxu3 %v4487_v19  ;;  %v1688_v19 = vperm.slane %v1685_v12, 1 }
 0x2ba   :  { %v1417_v9 = vpop.xlane.xlu0 %1416 }
 0x2bb   :  { %v1422_v10 = vadd.f32 %v4081_v5, %v1417_v9 }
 0x2bd   :  { %1424 = vst.msk [vmem:[%s4526_s14] sm:$0xff] %vm1423_vm0, %v1422_v10  ;;  %s2564_s14 = sshll.u32 %s4324_s8, 4  ;;  %s2565_s14 = int_to_ptr.vmem [resolvable:$true] %s2564_s14 }
 0x2be   :  { %v2391_v11 = vpop.f32.mrf.mxu0 }
 0x2c4   :  { %v2352_v13 = vpop.f32.mrf.mxu1  ;;  %v2365_v14 = vpop.f32.mrf.mxu2 }
 0x2c5   :  { %v2353_v15 = vadd.f32 %v2352_v13, %v1687_v59 }
 0x2c6   :  { %v2393_v16 = vpop.f32.mrf.mxu0 }
 0x2c7   :  { %v2366_v17 = vadd.f32 %v2365_v14, %v2353_v15 }
 0x2c9   :  { %2551 = vst [vmem:[#allocation17] sm:$0xff] %v2366_v17 }
 0x2cb   :  { %v2378_v18 = vpop.f32.mrf.mxu3 }
 0x2cc   :  { %v2379_v20 = vadd.f32 %v2378_v18, %v1688_v19  ;;  %v2354_v21 = vpop.f32.mrf.mxu1  ;;  %v2367_v23 = vpop.f32.mrf.mxu2 }
 0x2ce   :  { %v2392_v24 = vadd.f32 %v2391_v11, %v2379_v20 }
 0x2cf   :  { %v2443_v25 = vpop.f32.mrf.mxu0 }
 0x2d0   :  { %2552 = vst [vmem:[#allocation17 + $0x8] sm:$0xff] %v2392_v24 }
 0x2d3   :  { %v2380_v27 = vpop.f32.mrf.mxu3 }
 0x2d4   :  { %v2404_v28 = vpop.f32.mrf.mxu1  ;;  %v2417_v29 = vpop.f32.mrf.mxu2 }
 0x2d5   :  { %v2405_v30 = vadd.f32 %v2404_v28, %v1689_v26 }
 0x2d7   :  { %v2418_v31 = vadd.f32 %v2417_v29, %v2405_v30  ;;  %v2445_v33 = vpop.f32.mrf.mxu0 }
 0x2d9   :  { %2553 = vst [vmem:[#allocation17 + $0x10] sm:$0xff] %v2418_v31 }
 0x2db   :  { %v2430_v35 = vpop.f32.mrf.mxu3 }
 0x2dc   :  { %v2431_v38 = vadd.f32 %v2430_v35, %v1690_v34  ;;  %v2406_v39 = vpop.f32.mrf.mxu1  ;;  %v2419_v40 = vpop.f32.mrf.mxu2 }
 0x2de   :  { %v2444_v58 = vadd.f32 %v2443_v25, %v2431_v38 }
 0x2df   :  { %v2495_v42 = vpop.f32.mrf.mxu0 }
 0x2e0   :  { %2554 = vst [vmem:[#allocation17 + $0x18] sm:$0xff] %v2444_v58 }
 0x2e3   :  { %v2432_v44 = vpop.f32.mrf.mxu3 }
 0x2e4   :  { %v2456_v45 = vpop.f32.mrf.mxu1  ;;  %v2469_v46 = vpop.f32.mrf.mxu2 }
 0x2e5   :  { %v2457_v6 = vadd.f32 %v2456_v45, %v1691_v43 }
 0x2e7   :  { %v2470_v7 = vadd.f32 %v2469_v46, %v2457_v6  ;;  %v2497_v36 = vpop.f32.mrf.mxu0 }
 0x2e9   :  { %2555 = vst [vmem:[#allocation17 + $0x20] sm:$0xff] %v2470_v7 }
 0x2eb   :  { %v2482_v41 = vpop.f32.mrf.mxu3 }
 0x2ec   :  { %v2483_v32 = vadd.f32 %v2482_v41, %v1692_v47  ;;  %v2458_v8 = vpop.f32.mrf.mxu1  ;;  %v2471_v37 = vpop.f32.mrf.mxu2 }
 0x2ee   :  { %v2496_v48 = vadd.f32 %v2495_v42, %v2483_v32 }
 0x2f0   :  { %2556 = vst [vmem:[#allocation17 + $0x28] sm:$0xff] %v2496_v48 }
 0x2f3   :  { %v2484_v49 = vpop.f32.mrf.mxu3 }
 0x2ff   :  { %v2547_v50 = vpop.f32.mrf.mxu0 }
 0x304   :  { %v2508_v52 = vpop.f32.mrf.mxu1  ;;  %v2521_v53 = vpop.f32.mrf.mxu2 }
 0x305   :  { %v2509_v54 = vadd.f32 %v2508_v52, %v1693_v51 }
 0x307   :  { %v2522_v55 = vadd.f32 %v2521_v53, %v2509_v54  ;;  %v2549_v56 = vpop.f32.mrf.mxu0 }
 0x309   :  { %2557 = vst [vmem:[#allocation17 + $0x30] sm:$0xff] %v2522_v55 }
 0x30b   :  { %v2534_v60 = vpop.f32.mrf.mxu3 }
 0x30c   :  { %v2535_v61 = vadd.f32 %v2534_v60, %v1694_v57  ;;  %v2510_v62 = vpop.f32.mrf.mxu1  ;;  %v2523_v63 = vpop.f32.mrf.mxu2 }
 0x30e   :  { %v2548_v0 = vadd.f32 %v2547_v50, %v2535_v61 }
 0x310   :  { %2558 = vst [vmem:[#allocation17 + $0x38] sm:$0xff] %v2548_v0 }
 0x311   :  { %2569 = dma.vmem_to_hbm [thread:$0]  %s2565_s14, 1024, %s2567_s27, [#allocation5]  }
 0x313   :  { %v2536_v1 = vpop.f32.mrf.mxu3 }
 0x314   :  { %4308 = dma.done.wait [#allocation5], 1024  }
 0x315   :  { %4309 = vsyncadd [#allocation5], 4294966272 }
 0x316   :  { %2578 = vsyncpa [#allocation4], 1 }
 0x317   :  { %2579 = vsyncpa [#allocation7], 1 }
 0x318   :  { %2580 = vsyncpa [#allocation10], 1 }
 0x319   :  { %2581 = vsyncpa [#allocation13], 1 }
 0x31a   :  { %2582 = vsyncpa [#allocation16], 1 }
 0x31b   :  { %2583 = vsyncpa [#allocation5], 1 }

</bundles_post_ra>
